<compile_context>
chip_gen: v6e
topology: v6e:2x2x1
jax: 0.10.0
libtpu: 0.0.40
codegen_flags: <defaults>
</compile_context>

<pallas_src>
import functools

import jax
import jax.numpy as jnp
from jax.experimental import pallas as pl
from jax.experimental.pallas import tpu as pltpu

NUM_CLASS = 4
EPS = 1e-5
LANES = 128


def _class_select(tgt, cls):
    # ``target[target == 4] = 3`` is absorbed by matching "label >= 3" for the
    # last class (exact for the module's label domain {0, 1, 2, 3, 4}).
    if cls == NUM_CLASS - 1:
        return tgt >= (NUM_CLASS - 1)
    return tgt == cls


# ---------------------------------------------------------------------------
# Fast path: voxel axis re-laid out as (rows, 128) lanes.
# ---------------------------------------------------------------------------
def _dice_sums_2d_kernel(out_ref, tgt_ref, sums_ref,
                         inter_acc, osum_acc, tsum_acc,
                         *, rows_total, rows_tile, tiles_per_split, no_tail):
    si = pl.program_id(1)
    ti = pl.program_id(2)

    @pl.when(ti == 0)
    def _():
        inter_acc[...] = jnp.zeros_like(inter_acc)
        osum_acc[...] = jnp.zeros_like(osum_acc)
        tsum_acc[...] = jnp.zeros_like(tsum_acc)

    tgt = tgt_ref[...]                       # (RT, 128) int
    nvr = rows_tile // 8                     # number of (8,128) vreg rows per tile

    def accumulate(row_valid):
        for cls in range(NUM_CLASS):
            out_c = out_ref[cls].astype(jnp.float32)          # (RT, 128)
            sel = _class_select(tgt, cls)                      # (RT, 128) bool
            if row_valid is not None:
                sel = jnp.logical_and(sel, row_valid)
                out_c = jnp.where(row_valid, out_c, 0.0)
            # Pure VALU vreg-tree adds over the row axis; no cross-lane reduce here.
            osum_acc[cls] += jnp.sum(out_c.reshape(nvr, 8, LANES), axis=0)
            inter_acc[cls] += jnp.sum(
                jnp.where(sel, out_c, 0.0).reshape(nvr, 8, LANES), axis=0)
            tsum_acc[cls] += jnp.sum(
                jnp.where(sel, 1.0, 0.0).reshape(nvr, 8, LANES), axis=0)

    if no_tail:
        accumulate(None)                     # tiling is exact: no masking at all
    else:
        row_start = (si * tiles_per_split + ti) * rows_tile
        is_full = row_start + rows_tile <= rows_total

        @pl.when(is_full)                    # hot path: unmasked full tiles
        def _():
            accumulate(None)

        @pl.when(jnp.logical_not(is_full))   # cold path: tail / over-split tiles
        def _():
            local_row = jax.lax.broadcasted_iota(jnp.int32, (rows_tile, LANES), 0)
            accumulate(row_start + local_row < rows_total)

    @pl.when(ti == pl.num_programs(2) - 1)
    def _():
        def _collapse(acc):                  # (C, 8, 128) -> (C, 1)
            return jnp.sum(jnp.sum(acc[...], axis=2), axis=1, keepdims=True)
        sums_ref[...] = jnp.concatenate(
            [_collapse(inter_acc), _collapse(osum_acc), _collapse(tsum_acc)],
            axis=1)                          # (C, 3)


def _dice_partial_sums_2d(output, target, *, rows_per_tile, voxel_split):
    b, c = output.shape[0], output.shape[1]
    n = output.shape[2] * output.shape[3] * output.shape[4]
    rows_total = n // LANES

    # Metadata-only reshapes (no transpose, no pad, no dtype copy).
    out4 = output.reshape(b, c, rows_total, LANES)
    tgt3 = target.reshape(b, rows_total, LANES)

    rows_tile = max(8, min(rows_per_tile, (rows_total // 8) * 8))
    assert rows_tile % 8 == 0

    tiles_total = pl.cdiv(rows_total, rows_tile)
    nsplit = max(1, min(voxel_split, tiles_total))
    tiles_per_split = pl.cdiv(tiles_total, nsplit)
    no_tail = (rows_total % rows_tile == 0) and (nsplit * tiles_per_split == tiles_total)
    last_tile = tiles_total - 1

    # Clamp over-split tile indices to a valid block; the kernel masks them out.
    def out_map(bi, si, ti):
        return (bi, 0, jnp.minimum(si * tiles_per_split + ti, last_tile), 0)

    def tgt_map(bi, si, ti):
        return (bi, jnp.minimum(si * tiles_per_split + ti, last_tile), 0)

    kernel = functools.partial(
        _dice_sums_2d_kernel, rows_total=rows_total, rows_tile=rows_tile,
        tiles_per_split=tiles_per_split, no_tail=no_tail)

    sums = pl.pallas_call(
        kernel,
        out_shape=jax.ShapeDtypeStruct((b * nsplit, c, 3), jnp.float32),
        grid_spec=pltpu.PrefetchScalarGridSpec(
            num_scalar_prefetch=0,
            grid=(b, nsplit, tiles_per_split),
            in_specs=[
                pl.BlockSpec((pl.Squeezed(), c, rows_tile, LANES), out_map),
                pl.BlockSpec((pl.Squeezed(), rows_tile, LANES), tgt_map),
            ],
            out_specs=pl.BlockSpec(
                (pl.Squeezed(), c, 3),
                lambda bi, si, ti: (bi * nsplit + si, 0, 0)),
            scratch_shapes=[
                pltpu.VMEM((c, 8, LANES), jnp.float32),   # intersection
                pltpu.VMEM((c, 8, LANES), jnp.float32),   # sum(output_c)
                pltpu.VMEM((c, 8, LANES), jnp.float32),   # count(target == c)
            ],
        ),
        compiler_params=pltpu.CompilerParams(
            dimension_semantics=("parallel", "parallel", "arbitrary")),
    )(out4, tgt3)
    return sums                               # (b * nsplit, C, 3)


# ---------------------------------------------------------------------------
# Fallback path: voxel count not divisible by 128 (1-D lane layout).
# ---------------------------------------------------------------------------
def _dice_sums_1d_kernel(out_ref, tgt_ref, sums_ref,
                         inter_acc, osum_acc, tsum_acc,
                         *, n_per_b, tile_n, no_tail):
    ti = pl.program_id(1)

    @pl.when(ti == 0)
    def _():
        inter_acc[...] = jnp.zeros_like(inter_acc)
        osum_acc[...] = jnp.zeros_like(osum_acc)
        tsum_acc[...] = jnp.zeros_like(tsum_acc)

    out = out_ref[...].astype(jnp.float32)                    # (C, T)
    tgt = tgt_ref[...]                                        # (1, T) int
    cls_ids = jax.lax.broadcasted_iota(jnp.int32, out.shape, 0)

    def accumulate(valid):
        tgt_r = jnp.where(tgt == 4, NUM_CLASS - 1, tgt).astype(jnp.int32)
        sel = tgt_r == cls_ids                                # (C, T)
        out_v = out
        if valid is not None:
            sel = jnp.logical_and(sel, valid)
            out_v = jnp.where(valid, out, 0.0)
        inter_acc[...] += jnp.sum(jnp.where(sel, out_v, 0.0), axis=1, keepdims=True)
        osum_acc[...] += jnp.sum(out_v, axis=1, keepdims=True)
        tsum_acc[...] += jnp.sum(jnp.where(sel, 1.0, 0.0), axis=1, keepdims=True)

    if no_tail:
        accumulate(None)
    else:
        is_last = ti == pl.num_programs(1) - 1

        @pl.when(jnp.logical_not(is_last))
        def _():
            accumulate(None)

        @pl.when(is_last)
        def _():
            lane = jax.lax.broadcasted_iota(jnp.int32, tgt.shape, 1) + ti * tile_n
            accumulate(lane < n_per_b)

    @pl.when(ti == pl.num_programs(1) - 1)
    def _():
        sums_ref[...] = jnp.concatenate(
            [inter_acc[...], osum_acc[...], tsum_acc[...]], axis=1)


def _dice_partial_sums_1d(output, target, *, tile_n):
    b, c = output.shape[0], output.shape[1]
    n = output.shape[2] * output.shape[3] * output.shape[4]

    out3 = output.reshape(b, c, n)
    tgt3 = target.reshape(b, 1, n)

    if n <= tile_n:
        tile = n                               # full-extent block: layout-legal
    else:
        assert tile_n % LANES == 0, "tile_n must be a multiple of 128"
        tile = tile_n
    grid_t = pl.cdiv(n, tile)
    no_tail = (n % tile == 0)

    kernel = functools.partial(_dice_sums_1d_kernel,
                               n_per_b=n, tile_n=tile, no_tail=no_tail)

    sums = pl.pallas_call(
        kernel,
        out_shape=jax.ShapeDtypeStruct((b, c, 3), jnp.float32),
        grid_spec=pltpu.PrefetchScalarGridSpec(
            num_scalar_prefetch=0,
            grid=(b, grid_t),
            in_specs=[
                pl.BlockSpec((pl.Squeezed(), c, tile), lambda bi, ti: (bi, 0, ti)),
                pl.BlockSpec((pl.Squeezed(), 1, tile), lambda bi, ti: (bi, 0, ti)),
            ],
            out_specs=pl.BlockSpec((pl.Squeezed(), c, 3), lambda bi, ti: (bi, 0, 0)),
            scratch_shapes=[
                pltpu.VMEM((c, 1), jnp.float32),
                pltpu.VMEM((c, 1), jnp.float32),
                pltpu.VMEM((c, 1), jnp.float32),
            ],
        ),
        compiler_params=pltpu.CompilerParams(
            dimension_semantics=("parallel", "arbitrary")),
    )(out3, tgt3)
    return sums                                # (b, C, 3)


# ---------------------------------------------------------------------------
# Public entry point (forward semantics of the PyTorch softmax_dice module).
# ---------------------------------------------------------------------------
def softmax_dice_loss(output, target, *, rows_per_tile=1024, voxel_split=2,
                      tile_n=65536):
    """output: (b, 4, d, h, w) float probabilities; target: (b, d, h, w) int labels.

    Returns (loss0+loss1+loss2+loss3, 1-loss1, 1-loss2, 1-loss3).
    """
    b, c, d, h, w = output.shape
    assert c == NUM_CLASS, f"expected {NUM_CLASS} classes, got {c}"
    n = d * h * w

    if not jnp.issubdtype(target.dtype, jnp.integer):
        target = target.astype(jnp.int32)

    if n % LANES == 0 and (n // LANES) >= 8:
        sums = _dice_partial_sums_2d(output, target,
                                     rows_per_tile=rows_per_tile,
                                     voxel_split=voxel_split)
    else:
        sums = _dice_partial_sums_1d(output, target, tile_n=tile_n)

    inter = jnp.sum(sums[:, :, 0], axis=0)     # (C,) summed over batch/splits
    osum = jnp.sum(sums[:, :, 1], axis=0)
    tsum = jnp.sum(sums[:, :, 2], axis=0)

    # Dice(output_c, target_c) = 1 - 2*sum(o*t) / (sum(o) + sum(t) + eps)
    losses = 1.0 - 2.0 * inter / (osum + tsum + EPS)
    total = losses[0] + losses[1] + losses[2] + losses[3]
    return total, 1.0 - losses[1], 1.0 - losses[2], 1.0 - losses[3]


def _reference(output, target):
    """Pure-JAX reference mirroring the PyTorch module (``.cuda()`` is a no-op).

    Note: the in-place ``target[target == 4] = 3`` mutation is expressed
    functionally (JAX arrays are immutable)."""
    tgt = jnp.where(target == 4, 3, target)

    def dice(o, t):
        t = t.astype(jnp.float32)
        num = 2.0 * jnp.sum(o * t)
        den = jnp.sum(o) + jnp.sum(t) + EPS
        return 1.0 - num / den

    l0 = dice(output[:, 0], (tgt == 0))
    l1 = dice(output[:, 1], (tgt == 1))
    l2 = dice(output[:, 2], (tgt == 2))
    l3 = dice(output[:, 3], (tgt == 3))
    return l0 + l1 + l2 + l3, 1.0 - l1, 1.0 - l2, 1.0 - l3


if __name__ == "__main__":
    key = jax.random.PRNGKey(0)

    def make_case(k, shape):
        k1, k2 = jax.random.split(k)
        logits = jax.random.normal(k1, (shape[0], NUM_CLASS) + shape[1:],
                                   dtype=jnp.float32)
        probs = jax.nn.softmax(logits, axis=1)
        labels = jax.random.randint(k2, shape, 0, 5, dtype=jnp.int32)  # 0..4
        return probs, labels

    def check(got, ref):
        for g, r in zip(got, ref):
            assert jnp.allclose(g, r, rtol=1e-5, atol=1e-5), (g, r)

    k1, k2, k3 = jax.random.split(key, 3)

    # Case 1: voxel count divisible by 128 -> lane-dense (rows, 128) path.
    # rows_total = 20: exercises multi-tile accumulation, an uneven 2-way voxel
    # split (one clamped/fully-masked step), and a partial tail tile.
    out_a, tgt_a = make_case(k1, (2, 5, 16, 32))                 # n = 2560
    ref_a = _reference(out_a, tgt_a)
    check(jax.block_until_ready(softmax_dice_loss(out_a, tgt_a)), ref_a)
    check(jax.block_until_ready(
        softmax_dice_loss(out_a, tgt_a, rows_per_tile=8, voxel_split=2)), ref_a)

    # Case 2: b = 1 (common for 3-D volumes) still uses both parallel splits;
    # exact tiling exercises the trace-time no-mask fast path.
    out_b, tgt_b = make_case(k2, (1, 8, 16, 16))                 # n = 2048
    check(jax.block_until_ready(
        softmax_dice_loss(out_b, tgt_b, rows_per_tile=8, voxel_split=2)),
        _reference(out_b, tgt_b))

    # Case 3: voxel count NOT divisible by 128 -> 1-D fallback path
    # (single full-extent tile, plus a small-tile variant with a lane tail).
    out_c, tgt_c = make_case(k3, (2, 5, 8, 8))                   # n = 320
    ref_c = _reference(out_c, tgt_c)
    check(jax.block_until_ready(softmax_dice_loss(out_c, tgt_c)), ref_c)
    check(jax.block_until_ready(softmax_dice_loss(out_c, tgt_c, tile_n=128)), ref_c)

    print("KERNEL_OK")
</pallas_src>

<mosaic_0001>
module attributes {stable_mosaic.version = 11 : i64} {
  func.func @_dice_sums_2d_kernel(%arg0: i32, %arg1: i32, %arg2: i32, %arg3: memref<1x4x16x128xf32, #tpu.memory_space<vmem>>, %arg4: memref<1x16x128xi32, #tpu.memory_space<vmem>>, %arg5: memref<1x4x3xf32, #tpu.memory_space<vmem>>, %arg6: memref<4x8x128xf32, #tpu.memory_space<vmem>>, %arg7: memref<4x8x128xf32, #tpu.memory_space<vmem>>, %arg8: memref<4x8x128xf32, #tpu.memory_space<vmem>>) attributes {dimension_semantics = [#tpu.dimension_semantics<parallel>, #tpu.dimension_semantics<parallel>, #tpu.dimension_semantics<arbitrary>], iteration_bounds = array<i64: 2, 2, 1>, scalar_prefetch = 0 : i64, scratch_operands = 3 : i64, tpu.core_type = #tpu.core_type<tc>, window_params = [{transform_indices = @transform_0, window_bounds = array<i64: 1, 4, 16, 128>}, {transform_indices = @transform_1, window_bounds = array<i64: 1, 16, 128>}, {transform_indices = @transform_2, window_bounds = array<i64: 1, 4, 3>}]} {
    %c0_i32 = arith.constant 0 : i32
    %0 = arith.cmpi eq, %arg2, %c0_i32 : i32
    %1 = arith.extui %0 : i1 to i32
    %c0_i32_0 = arith.constant 0 : i32
    %2 = arith.cmpi ne, %1, %c0_i32_0 : i32
    scf.if %2 {
      %cst = arith.constant 0.000000e+00 : f32
      %18 = vector.broadcast %cst : f32 to vector<4x8x128xf32>
      %c0_8 = arith.constant 0 : index
      %c0_9 = arith.constant 0 : index
      %c0_10 = arith.constant 0 : index
      %19 = vector.load %arg6[%c0_8, %c0_9, %c0_10] : memref<4x8x128xf32, #tpu.memory_space<vmem>>, vector<4x8x128xf32>
      tpu.vector_store %arg6[%c0_8, %c0_9, %c0_10], %18 {strides = array<i32>} : memref<4x8x128xf32, #tpu.memory_space<vmem>>, vector<4x8x128xf32>,
      %cst_11 = arith.constant 0.000000e+00 : f32
      %20 = vector.broadcast %cst_11 : f32 to vector<4x8x128xf32>
      %c0_12 = arith.constant 0 : index
      %c0_13 = arith.constant 0 : index
      %c0_14 = arith.constant 0 : index
      %21 = vector.load %arg7[%c0_12, %c0_13, %c0_14] : memref<4x8x128xf32, #tpu.memory_space<vmem>>, vector<4x8x128xf32>
      tpu.vector_store %arg7[%c0_12, %c0_13, %c0_14], %20 {strides = array<i32>} : memref<4x8x128xf32, #tpu.memory_space<vmem>>, vector<4x8x128xf32>,
      %cst_15 = arith.constant 0.000000e+00 : f32
      %22 = vector.broadcast %cst_15 : f32 to vector<4x8x128xf32>
      %c0_16 = arith.constant 0 : index
      %c0_17 = arith.constant 0 : index
      %c0_18 = arith.constant 0 : index
      %23 = vector.load %arg8[%c0_16, %c0_17, %c0_18] : memref<4x8x128xf32, #tpu.memory_space<vmem>>, vector<4x8x128xf32>
      tpu.vector_store %arg8[%c0_16, %c0_17, %c0_18], %22 {strides = array<i32>} : memref<4x8x128xf32, #tpu.memory_space<vmem>>, vector<4x8x128xf32>,
    } else {
    }
    %c0 = arith.constant 0 : index
    %c0_1 = arith.constant 0 : index
    %c0_2 = arith.constant 0 : index
    %3 = vector.load %arg4[%c0, %c0_1, %c0_2] : memref<1x16x128xi32, #tpu.memory_space<vmem>>, vector<1x16x128xi32>
    %4 = vector.shape_cast %3 : vector<1x16x128xi32> to vector<16x128xi32>
    %c1_i32 = arith.constant 1 : i32
    %5 = arith.muli %arg1, %c1_i32 : i32
    %6 = arith.addi %5, %arg2 : i32
    %c16_i32 = arith.constant 16 : i32
    %7 = arith.muli %6, %c16_i32 : i32
    %c16_i32_3 = arith.constant 16 : i32
    %8 = arith.addi %7, %c16_i32_3 : i32
    %c20_i32 = arith.constant 20 : i32
    %9 = arith.cmpi sle, %8, %c20_i32 : i32
    %10 = arith.extui %9 : i1 to i32
    %c0_i32_4 = arith.constant 0 : i32
    %11 = arith.cmpi ne, %10, %c0_i32_4 : i32
    scf.if %11 {
      %c0_8 = arith.constant 0 : index
      %c0_9 = arith.constant 0 : index
      %c0_10 = arith.constant 0 : index
      %c0_11 = arith.constant 0 : index
      %18 = vector.load %arg3[%c0_8, %c0_9, %c0_10, %c0_11] : memref<1x4x16x128xf32, #tpu.memory_space<vmem>>, vector<1x1x16x128xf32>
      %19 = vector.shape_cast %18 : vector<1x1x16x128xf32> to vector<16x128xf32>
      %c0_i32_12 = arith.constant 0 : i32
      %20 = vector.broadcast %c0_i32_12 : i32 to vector<16x128xi32>
      %21 = arith.cmpi eq, %4, %20 : vector<16x128xi32>
      %c0_13 = arith.constant 0 : index
      %c0_14 = arith.constant 0 : index
      %c0_15 = arith.constant 0 : index
      %22 = vector.load %arg7[%c0_13, %c0_14, %c0_15] : memref<4x8x128xf32, #tpu.memory_space<vmem>>, vector<1x8x128xf32>
      %23 = vector.shape_cast %22 : vector<1x8x128xf32> to vector<8x128xf32>
      %24 = vector.shape_cast %19 : vector<16x128xf32> to vector<2x8x128xf32>
      %cst = arith.constant dense<0.000000e+00> : vector<8x128xf32>
      %25 = vector.multi_reduction <add>, %24, %cst [0] : vector<2x8x128xf32> to vector<8x128xf32>
      %26 = arith.addf %23, %25 : vector<8x128xf32>
      %c0_16 = arith.constant 0 : index
      %c0_17 = arith.constant 0 : index
      %c0_18 = arith.constant 0 : index
      %27 = vector.load %arg7[%c0_16, %c0_17, %c0_18] : memref<4x8x128xf32, #tpu.memory_space<vmem>>, vector<1x8x128xf32>
      %28 = vector.shape_cast %27 : vector<1x8x128xf32> to vector<8x128xf32>
      %29 = vector.shape_cast %26 : vector<8x128xf32> to vector<1x8x128xf32>
      tpu.vector_store %arg7[%c0_16, %c0_17, %c0_18], %29 {strides = array<i32>} : memref<4x8x128xf32, #tpu.memory_space<vmem>>, vector<1x8x128xf32>,
      %c0_19 = arith.constant 0 : index
      %c0_20 = arith.constant 0 : index
      %c0_21 = arith.constant 0 : index
      %30 = vector.load %arg6[%c0_19, %c0_20, %c0_21] : memref<4x8x128xf32, #tpu.memory_space<vmem>>, vector<1x8x128xf32>
      %31 = vector.shape_cast %30 : vector<1x8x128xf32> to vector<8x128xf32>
      %cst_22 = arith.constant 0.000000e+00 : f32
      %32 = vector.broadcast %cst_22 : f32 to vector<16x128xf32>
      %33 = arith.select %21, %19, %32 : vector<16x128xi1>, vector<16x128xf32>
      %34 = vector.shape_cast %33 : vector<16x128xf32> to vector<2x8x128xf32>
      %cst_23 = arith.constant dense<0.000000e+00> : vector<8x128xf32>
      %35 = vector.multi_reduction <add>, %34, %cst_23 [0] : vector<2x8x128xf32> to vector<8x128xf32>
      %36 = arith.addf %31, %35 : vector<8x128xf32>
      %c0_24 = arith.constant 0 : index
      %c0_25 = arith.constant 0 : index
      %c0_26 = arith.constant 0 : index
      %37 = vector.load %arg6[%c0_24, %c0_25, %c0_26] : memref<4x8x128xf32, #tpu.memory_space<vmem>>, vector<1x8x128xf32>
      %38 = vector.shape_cast %37 : vector<1x8x128xf32> to vector<8x128xf32>
      %39 = vector.shape_cast %36 : vector<8x128xf32> to vector<1x8x128xf32>
      tpu.vector_store %arg6[%c0_24, %c0_25, %c0_26], %39 {strides = array<i32>} : memref<4x8x128xf32, #tpu.memory_space<vmem>>, vector<1x8x128xf32>,
      %c0_27 = arith.constant 0 : index
      %c0_28 = arith.constant 0 : index
      %c0_29 = arith.constant 0 : index
      %40 = vector.load %arg8[%c0_27, %c0_28, %c0_29] : memref<4x8x128xf32, #tpu.memory_space<vmem>>, vector<1x8x128xf32>
      %41 = vector.shape_cast %40 : vector<1x8x128xf32> to vector<8x128xf32>
      %cst_30 = arith.constant 1.000000e+00 : f32
      %cst_31 = arith.constant 0.000000e+00 : f32
      %42 = vector.broadcast %cst_30 : f32 to vector<16x128xf32>
      %43 = vector.broadcast %cst_31 : f32 to vector<16x128xf32>
      %44 = arith.select %21, %42, %43 : vector<16x128xi1>, vector<16x128xf32>
      %45 = vector.shape_cast %44 : vector<16x128xf32> to vector<2x8x128xf32>
      %cst_32 = arith.constant dense<0.000000e+00> : vector<8x128xf32>
      %46 = vector.multi_reduction <add>, %45, %cst_32 [0] : vector<2x8x128xf32> to vector<8x128xf32>
      %47 = arith.addf %41, %46 : vector<8x128xf32>
      %c0_33 = arith.constant 0 : index
      %c0_34 = arith.constant 0 : index
      %c0_35 = arith.constant 0 : index
      %48 = vector.load %arg8[%c0_33, %c0_34, %c0_35] : memref<4x8x128xf32, #tpu.memory_space<vmem>>, vector<1x8x128xf32>
      %49 = vector.shape_cast %48 : vector<1x8x128xf32> to vector<8x128xf32>
      %50 = vector.shape_cast %47 : vector<8x128xf32> to vector<1x8x128xf32>
      tpu.vector_store %arg8[%c0_33, %c0_34, %c0_35], %50 {strides = array<i32>} : memref<4x8x128xf32, #tpu.memory_space<vmem>>, vector<1x8x128xf32>,
      %c0_36 = arith.constant 0 : index
      %c1 = arith.constant 1 : index
      %c0_37 = arith.constant 0 : index
      %c0_38 = arith.constant 0 : index
      %51 = vector.load %arg3[%c0_36, %c1, %c0_37, %c0_38] : memref<1x4x16x128xf32, #tpu.memory_space<vmem>>, vector<1x1x16x128xf32>
      %52 = vector.shape_cast %51 : vector<1x1x16x128xf32> to vector<16x128xf32>
      %c1_i32_39 = arith.constant 1 : i32
      %53 = vector.broadcast %c1_i32_39 : i32 to vector<16x128xi32>
      %54 = arith.cmpi eq, %4, %53 : vector<16x128xi32>
      %c1_40 = arith.constant 1 : index
      %c0_41 = arith.constant 0 : index
      %c0_42 = arith.constant 0 : index
      %55 = vector.load %arg7[%c1_40, %c0_41, %c0_42] : memref<4x8x128xf32, #tpu.memory_space<vmem>>, vector<1x8x128xf32>
      %56 = vector.shape_cast %55 : vector<1x8x128xf32> to vector<8x128xf32>
      %57 = vector.shape_cast %52 : vector<16x128xf32> to vector<2x8x128xf32>
      %cst_43 = arith.constant dense<0.000000e+00> : vector<8x128xf32>
      %58 = vector.multi_reduction <add>, %57, %cst_43 [0] : vector<2x8x128xf32> to vector<8x128xf32>
      %59 = arith.addf %56, %58 : vector<8x128xf32>
      %c1_44 = arith.constant 1 : index
      %c0_45 = arith.constant 0 : index
      %c0_46 = arith.constant 0 : index
      %60 = vector.load %arg7[%c1_44, %c0_45, %c0_46] : memref<4x8x128xf32, #tpu.memory_space<vmem>>, vector<1x8x128xf32>
      %61 = vector.shape_cast %60 : vector<1x8x128xf32> to vector<8x128xf32>
      %62 = vector.shape_cast %59 : vector<8x128xf32> to vector<1x8x128xf32>
      tpu.vector_store %arg7[%c1_44, %c0_45, %c0_46], %62 {strides = array<i32>} : memref<4x8x128xf32, #tpu.memory_space<vmem>>, vector<1x8x128xf32>,
      %c1_47 = arith.constant 1 : index
      %c0_48 = arith.constant 0 : index
      %c0_49 = arith.constant 0 : index
      %63 = vector.load %arg6[%c1_47, %c0_48, %c0_49] : memref<4x8x128xf32, #tpu.memory_space<vmem>>, vector<1x8x128xf32>
      %64 = vector.shape_cast %63 : vector<1x8x128xf32> to vector<8x128xf32>
      %cst_50 = arith.constant 0.000000e+00 : f32
      %65 = vector.broadcast %cst_50 : f32 to vector<16x128xf32>
      %66 = arith.select %54, %52, %65 : vector<16x128xi1>, vector<16x128xf32>
      %67 = vector.shape_cast %66 : vector<16x128xf32> to vector<2x8x128xf32>
      %cst_51 = arith.constant dense<0.000000e+00> : vector<8x128xf32>
      %68 = vector.multi_reduction <add>, %67, %cst_51 [0] : vector<2x8x128xf32> to vector<8x128xf32>
      %69 = arith.addf %64, %68 : vector<8x128xf32>
      %c1_52 = arith.constant 1 : index
      %c0_53 = arith.constant 0 : index
      %c0_54 = arith.constant 0 : index
      %70 = vector.load %arg6[%c1_52, %c0_53, %c0_54] : memref<4x8x128xf32, #tpu.memory_space<vmem>>, vector<1x8x128xf32>
      %71 = vector.shape_cast %70 : vector<1x8x128xf32> to vector<8x128xf32>
      %72 = vector.shape_cast %69 : vector<8x128xf32> to vector<1x8x128xf32>
      tpu.vector_store %arg6[%c1_52, %c0_53, %c0_54], %72 {strides = array<i32>} : memref<4x8x128xf32, #tpu.memory_space<vmem>>, vector<1x8x128xf32>,
      %c1_55 = arith.constant 1 : index
      %c0_56 = arith.constant 0 : index
      %c0_57 = arith.constant 0 : index
      %73 = vector.load %arg8[%c1_55, %c0_56, %c0_57] : memref<4x8x128xf32, #tpu.memory_space<vmem>>, vector<1x8x128xf32>
      %74 = vector.shape_cast %73 : vector<1x8x128xf32> to vector<8x128xf32>
      %cst_58 = arith.constant 1.000000e+00 : f32
      %cst_59 = arith.constant 0.000000e+00 : f32
      %75 = vector.broadcast %cst_58 : f32 to vector<16x128xf32>
      %76 = vector.broadcast %cst_59 : f32 to vector<16x128xf32>
      %77 = arith.select %54, %75, %76 : vector<16x128xi1>, vector<16x128xf32>
      %78 = vector.shape_cast %77 : vector<16x128xf32> to vector<2x8x128xf32>
      %cst_60 = arith.constant dense<0.000000e+00> : vector<8x128xf32>
      %79 = vector.multi_reduction <add>, %78, %cst_60 [0] : vector<2x8x128xf32> to vector<8x128xf32>
      %80 = arith.addf %74, %79 : vector<8x128xf32>
      %c1_61 = arith.constant 1 : index
      %c0_62 = arith.constant 0 : index
      %c0_63 = arith.constant 0 : index
      %81 = vector.load %arg8[%c1_61, %c0_62, %c0_63] : memref<4x8x128xf32, #tpu.memory_space<vmem>>, vector<1x8x128xf32>
      %82 = vector.shape_cast %81 : vector<1x8x128xf32> to vector<8x128xf32>
      %83 = vector.shape_cast %80 : vector<8x128xf32> to vector<1x8x128xf32>
      tpu.vector_store %arg8[%c1_61, %c0_62, %c0_63], %83 {strides = array<i32>} : memref<4x8x128xf32, #tpu.memory_space<vmem>>, vector<1x8x128xf32>,
      %c0_64 = arith.constant 0 : index
      %c2 = arith.constant 2 : index
      %c0_65 = arith.constant 0 : index
      %c0_66 = arith.constant 0 : index
      %84 = vector.load %arg3[%c0_64, %c2, %c0_65, %c0_66] : memref<1x4x16x128xf32, #tpu.memory_space<vmem>>, vector<1x1x16x128xf32>
      %85 = vector.shape_cast %84 : vector<1x1x16x128xf32> to vector<16x128xf32>
      %c2_i32 = arith.constant 2 : i32
      %86 = vector.broadcast %c2_i32 : i32 to vector<16x128xi32>
      %87 = arith.cmpi eq, %4, %86 : vector<16x128xi32>
      %c2_67 = arith.constant 2 : index
      %c0_68 = arith.constant 0 : index
      %c0_69 = arith.constant 0 : index
      %88 = vector.load %arg7[%c2_67, %c0_68, %c0_69] : memref<4x8x128xf32, #tpu.memory_space<vmem>>, vector<1x8x128xf32>
      %89 = vector.shape_cast %88 : vector<1x8x128xf32> to vector<8x128xf32>
      %90 = vector.shape_cast %85 : vector<16x128xf32> to vector<2x8x128xf32>
      %cst_70 = arith.constant dense<0.000000e+00> : vector<8x128xf32>
      %91 = vector.multi_reduction <add>, %90, %cst_70 [0] : vector<2x8x128xf32> to vector<8x128xf32>
      %92 = arith.addf %89, %91 : vector<8x128xf32>
      %c2_71 = arith.constant 2 : index
      %c0_72 = arith.constant 0 : index
      %c0_73 = arith.constant 0 : index
      %93 = vector.load %arg7[%c2_71, %c0_72, %c0_73] : memref<4x8x128xf32, #tpu.memory_space<vmem>>, vector<1x8x128xf32>
      %94 = vector.shape_cast %93 : vector<1x8x128xf32> to vector<8x128xf32>
      %95 = vector.shape_cast %92 : vector<8x128xf32> to vector<1x8x128xf32>
      tpu.vector_store %arg7[%c2_71, %c0_72, %c0_73], %95 {strides = array<i32>} : memref<4x8x128xf32, #tpu.memory_space<vmem>>, vector<1x8x128xf32>,
      %c2_74 = arith.constant 2 : index
      %c0_75 = arith.constant 0 : index
      %c0_76 = arith.constant 0 : index
      %96 = vector.load %arg6[%c2_74, %c0_75, %c0_76] : memref<4x8x128xf32, #tpu.memory_space<vmem>>, vector<1x8x128xf32>
      %97 = vector.shape_cast %96 : vector<1x8x128xf32> to vector<8x128xf32>
      %cst_77 = arith.constant 0.000000e+00 : f32
      %98 = vector.broadcast %cst_77 : f32 to vector<16x128xf32>
      %99 = arith.select %87, %85, %98 : vector<16x128xi1>, vector<16x128xf32>
      %100 = vector.shape_cast %99 : vector<16x128xf32> to vector<2x8x128xf32>
      %cst_78 = arith.constant dense<0.000000e+00> : vector<8x128xf32>
      %101 = vector.multi_reduction <add>, %100, %cst_78 [0] : vector<2x8x128xf32> to vector<8x128xf32>
      %102 = arith.addf %97, %101 : vector<8x128xf32>
      %c2_79 = arith.constant 2 : index
      %c0_80 = arith.constant 0 : index
      %c0_81 = arith.constant 0 : index
      %103 = vector.load %arg6[%c2_79, %c0_80, %c0_81] : memref<4x8x128xf32, #tpu.memory_space<vmem>>, vector<1x8x128xf32>
      %104 = vector.shape_cast %103 : vector<1x8x128xf32> to vector<8x128xf32>
      %105 = vector.shape_cast %102 : vector<8x128xf32> to vector<1x8x128xf32>
      tpu.vector_store %arg6[%c2_79, %c0_80, %c0_81], %105 {strides = array<i32>} : memref<4x8x128xf32, #tpu.memory_space<vmem>>, vector<1x8x128xf32>,
      %c2_82 = arith.constant 2 : index
      %c0_83 = arith.constant 0 : index
      %c0_84 = arith.constant 0 : index
      %106 = vector.load %arg8[%c2_82, %c0_83, %c0_84] : memref<4x8x128xf32, #tpu.memory_space<vmem>>, vector<1x8x128xf32>
      %107 = vector.shape_cast %106 : vector<1x8x128xf32> to vector<8x128xf32>
      %cst_85 = arith.constant 1.000000e+00 : f32
      %cst_86 = arith.constant 0.000000e+00 : f32
      %108 = vector.broadcast %cst_85 : f32 to vector<16x128xf32>
      %109 = vector.broadcast %cst_86 : f32 to vector<16x128xf32>
      %110 = arith.select %87, %108, %109 : vector<16x128xi1>, vector<16x128xf32>
      %111 = vector.shape_cast %110 : vector<16x128xf32> to vector<2x8x128xf32>
      %cst_87 = arith.constant dense<0.000000e+00> : vector<8x128xf32>
      %112 = vector.multi_reduction <add>, %111, %cst_87 [0] : vector<2x8x128xf32> to vector<8x128xf32>
      %113 = arith.addf %107, %112 : vector<8x128xf32>
      %c2_88 = arith.constant 2 : index
      %c0_89 = arith.constant 0 : index
      %c0_90 = arith.constant 0 : index
      %114 = vector.load %arg8[%c2_88, %c0_89, %c0_90] : memref<4x8x128xf32, #tpu.memory_space<vmem>>, vector<1x8x128xf32>
      %115 = vector.shape_cast %114 : vector<1x8x128xf32> to vector<8x128xf32>
      %116 = vector.shape_cast %113 : vector<8x128xf32> to vector<1x8x128xf32>
      tpu.vector_store %arg8[%c2_88, %c0_89, %c0_90], %116 {strides = array<i32>} : memref<4x8x128xf32, #tpu.memory_space<vmem>>, vector<1x8x128xf32>,
      %c0_91 = arith.constant 0 : index
      %c3 = arith.constant 3 : index
      %c0_92 = arith.constant 0 : index
      %c0_93 = arith.constant 0 : index
      %117 = vector.load %arg3[%c0_91, %c3, %c0_92, %c0_93] : memref<1x4x16x128xf32, #tpu.memory_space<vmem>>, vector<1x1x16x128xf32>
      %118 = vector.shape_cast %117 : vector<1x1x16x128xf32> to vector<16x128xf32>
      %c3_i32 = arith.constant 3 : i32
      %119 = vector.broadcast %c3_i32 : i32 to vector<16x128xi32>
      %120 = arith.cmpi sge, %4, %119 : vector<16x128xi32>
      %c3_94 = arith.constant 3 : index
      %c0_95 = arith.constant 0 : index
      %c0_96 = arith.constant 0 : index
      %121 = vector.load %arg7[%c3_94, %c0_95, %c0_96] : memref<4x8x128xf32, #tpu.memory_space<vmem>>, vector<1x8x128xf32>
      %122 = vector.shape_cast %121 : vector<1x8x128xf32> to vector<8x128xf32>
      %123 = vector.shape_cast %118 : vector<16x128xf32> to vector<2x8x128xf32>
      %cst_97 = arith.constant dense<0.000000e+00> : vector<8x128xf32>
      %124 = vector.multi_reduction <add>, %123, %cst_97 [0] : vector<2x8x128xf32> to vector<8x128xf32>
      %125 = arith.addf %122, %124 : vector<8x128xf32>
      %c3_98 = arith.constant 3 : index
      %c0_99 = arith.constant 0 : index
      %c0_100 = arith.constant 0 : index
      %126 = vector.load %arg7[%c3_98, %c0_99, %c0_100] : memref<4x8x128xf32, #tpu.memory_space<vmem>>, vector<1x8x128xf32>
      %127 = vector.shape_cast %126 : vector<1x8x128xf32> to vector<8x128xf32>
      %128 = vector.shape_cast %125 : vector<8x128xf32> to vector<1x8x128xf32>
      tpu.vector_store %arg7[%c3_98, %c0_99, %c0_100], %128 {strides = array<i32>} : memref<4x8x128xf32, #tpu.memory_space<vmem>>, vector<1x8x128xf32>,
      %c3_101 = arith.constant 3 : index
      %c0_102 = arith.constant 0 : index
      %c0_103 = arith.constant 0 : index
      %129 = vector.load %arg6[%c3_101, %c0_102, %c0_103] : memref<4x8x128xf32, #tpu.memory_space<vmem>>, vector<1x8x128xf32>
      %130 = vector.shape_cast %129 : vector<1x8x128xf32> to vector<8x128xf32>
      %cst_104 = arith.constant 0.000000e+00 : f32
      %131 = vector.broadcast %cst_104 : f32 to vector<16x128xf32>
      %132 = arith.select %120, %118, %131 : vector<16x128xi1>, vector<16x128xf32>
      %133 = vector.shape_cast %132 : vector<16x128xf32> to vector<2x8x128xf32>
      %cst_105 = arith.constant dense<0.000000e+00> : vector<8x128xf32>
      %134 = vector.multi_reduction <add>, %133, %cst_105 [0] : vector<2x8x128xf32> to vector<8x128xf32>
      %135 = arith.addf %130, %134 : vector<8x128xf32>
      %c3_106 = arith.constant 3 : index
      %c0_107 = arith.constant 0 : index
      %c0_108 = arith.constant 0 : index
      %136 = vector.load %arg6[%c3_106, %c0_107, %c0_108] : memref<4x8x128xf32, #tpu.memory_space<vmem>>, vector<1x8x128xf32>
      %137 = vector.shape_cast %136 : vector<1x8x128xf32> to vector<8x128xf32>
      %138 = vector.shape_cast %135 : vector<8x128xf32> to vector<1x8x128xf32>
      tpu.vector_store %arg6[%c3_106, %c0_107, %c0_108], %138 {strides = array<i32>} : memref<4x8x128xf32, #tpu.memory_space<vmem>>, vector<1x8x128xf32>,
      %c3_109 = arith.constant 3 : index
      %c0_110 = arith.constant 0 : index
      %c0_111 = arith.constant 0 : index
      %139 = vector.load %arg8[%c3_109, %c0_110, %c0_111] : memref<4x8x128xf32, #tpu.memory_space<vmem>>, vector<1x8x128xf32>
      %140 = vector.shape_cast %139 : vector<1x8x128xf32> to vector<8x128xf32>
      %cst_112 = arith.constant 1.000000e+00 : f32
      %cst_113 = arith.constant 0.000000e+00 : f32
      %141 = vector.broadcast %cst_112 : f32 to vector<16x128xf32>
      %142 = vector.broadcast %cst_113 : f32 to vector<16x128xf32>
      %143 = arith.select %120, %141, %142 : vector<16x128xi1>, vector<16x128xf32>
      %144 = vector.shape_cast %143 : vector<16x128xf32> to vector<2x8x128xf32>
      %cst_114 = arith.constant dense<0.000000e+00> : vector<8x128xf32>
      %145 = vector.multi_reduction <add>, %144, %cst_114 [0] : vector<2x8x128xf32> to vector<8x128xf32>
      %146 = arith.addf %140, %145 : vector<8x128xf32>
      %c3_115 = arith.constant 3 : index
      %c0_116 = arith.constant 0 : index
      %c0_117 = arith.constant 0 : index
      %147 = vector.load %arg8[%c3_115, %c0_116, %c0_117] : memref<4x8x128xf32, #tpu.memory_space<vmem>>, vector<1x8x128xf32>
      %148 = vector.shape_cast %147 : vector<1x8x128xf32> to vector<8x128xf32>
      %149 = vector.shape_cast %146 : vector<8x128xf32> to vector<1x8x128xf32>
      tpu.vector_store %arg8[%c3_115, %c0_116, %c0_117], %149 {strides = array<i32>} : memref<4x8x128xf32, #tpu.memory_space<vmem>>, vector<1x8x128xf32>,
    } else {
    }
    %true = arith.constant true
    %12 = arith.xori %9, %true : i1
    %13 = arith.extui %12 : i1 to i32
    %c0_i32_5 = arith.constant 0 : i32
    %14 = arith.cmpi ne, %13, %c0_i32_5 : i32
    scf.if %14 {
      %18 = tpu.iota {dimensions = array<i32: 0>} : vector<16x128xi32>
      %19 = vector.broadcast %7 : i32 to vector<16x128xi32>
      %20 = arith.addi %19, %18 : vector<16x128xi32>
      %c20_i32_8 = arith.constant 20 : i32
      %21 = vector.broadcast %c20_i32_8 : i32 to vector<16x128xi32>
      %22 = arith.cmpi slt, %20, %21 : vector<16x128xi32>
      %c0_9 = arith.constant 0 : index
      %c0_10 = arith.constant 0 : index
      %c0_11 = arith.constant 0 : index
      %c0_12 = arith.constant 0 : index
      %23 = vector.load %arg3[%c0_9, %c0_10, %c0_11, %c0_12] : memref<1x4x16x128xf32, #tpu.memory_space<vmem>>, vector<1x1x16x128xf32>
      %24 = vector.shape_cast %23 : vector<1x1x16x128xf32> to vector<16x128xf32>
      %c0_i32_13 = arith.constant 0 : i32
      %25 = vector.broadcast %c0_i32_13 : i32 to vector<16x128xi32>
      %26 = arith.cmpi eq, %4, %25 : vector<16x128xi32>
      %27 = arith.andi %26, %22 : vector<16x128xi1>
      %cst = arith.constant 0.000000e+00 : f32
      %28 = vector.broadcast %cst : f32 to vector<16x128xf32>
      %29 = arith.select %22, %24, %28 : vector<16x128xi1>, vector<16x128xf32>
      %c0_14 = arith.constant 0 : index
      %c0_15 = arith.constant 0 : index
      %c0_16 = arith.constant 0 : index
      %30 = vector.load %arg7[%c0_14, %c0_15, %c0_16] : memref<4x8x128xf32, #tpu.memory_space<vmem>>, vector<1x8x128xf32>
      %31 = vector.shape_cast %30 : vector<1x8x128xf32> to vector<8x128xf32>
      %32 = vector.shape_cast %29 : vector<16x128xf32> to vector<2x8x128xf32>
      %cst_17 = arith.constant dense<0.000000e+00> : vector<8x128xf32>
      %33 = vector.multi_reduction <add>, %32, %cst_17 [0] : vector<2x8x128xf32> to vector<8x128xf32>
      %34 = arith.addf %31, %33 : vector<8x128xf32>
      %c0_18 = arith.constant 0 : index
      %c0_19 = arith.constant 0 : index
      %c0_20 = arith.constant 0 : index
      %35 = vector.load %arg7[%c0_18, %c0_19, %c0_20] : memref<4x8x128xf32, #tpu.memory_space<vmem>>, vector<1x8x128xf32>
      %36 = vector.shape_cast %35 : vector<1x8x128xf32> to vector<8x128xf32>
      %37 = vector.shape_cast %34 : vector<8x128xf32> to vector<1x8x128xf32>
      tpu.vector_store %arg7[%c0_18, %c0_19, %c0_20], %37 {strides = array<i32>} : memref<4x8x128xf32, #tpu.memory_space<vmem>>, vector<1x8x128xf32>,
      %c0_21 = arith.constant 0 : index
      %c0_22 = arith.constant 0 : index
      %c0_23 = arith.constant 0 : index
      %38 = vector.load %arg6[%c0_21, %c0_22, %c0_23] : memref<4x8x128xf32, #tpu.memory_space<vmem>>, vector<1x8x128xf32>
      %39 = vector.shape_cast %38 : vector<1x8x128xf32> to vector<8x128xf32>
      %cst_24 = arith.constant 0.000000e+00 : f32
      %40 = vector.broadcast %cst_24 : f32 to vector<16x128xf32>
      %41 = arith.select %27, %29, %40 : vector<16x128xi1>, vector<16x128xf32>
      %42 = vector.shape_cast %41 : vector<16x128xf32> to vector<2x8x128xf32>
      %cst_25 = arith.constant dense<0.000000e+00> : vector<8x128xf32>
      %43 = vector.multi_reduction <add>, %42, %cst_25 [0] : vector<2x8x128xf32> to vector<8x128xf32>
      %44 = arith.addf %39, %43 : vector<8x128xf32>
      %c0_26 = arith.constant 0 : index
      %c0_27 = arith.constant 0 : index
      %c0_28 = arith.constant 0 : index
      %45 = vector.load %arg6[%c0_26, %c0_27, %c0_28] : memref<4x8x128xf32, #tpu.memory_space<vmem>>, vector<1x8x128xf32>
      %46 = vector.shape_cast %45 : vector<1x8x128xf32> to vector<8x128xf32>
      %47 = vector.shape_cast %44 : vector<8x128xf32> to vector<1x8x128xf32>
      tpu.vector_store %arg6[%c0_26, %c0_27, %c0_28], %47 {strides = array<i32>} : memref<4x8x128xf32, #tpu.memory_space<vmem>>, vector<1x8x128xf32>,
      %c0_29 = arith.constant 0 : index
      %c0_30 = arith.constant 0 : index
      %c0_31 = arith.constant 0 : index
      %48 = vector.load %arg8[%c0_29, %c0_30, %c0_31] : memref<4x8x128xf32, #tpu.memory_space<vmem>>, vector<1x8x128xf32>
      %49 = vector.shape_cast %48 : vector<1x8x128xf32> to vector<8x128xf32>
      %cst_32 = arith.constant 1.000000e+00 : f32
      %cst_33 = arith.constant 0.000000e+00 : f32
      %50 = vector.broadcast %cst_32 : f32 to vector<16x128xf32>
      %51 = vector.broadcast %cst_33 : f32 to vector<16x128xf32>
      %52 = arith.select %27, %50, %51 : vector<16x128xi1>, vector<16x128xf32>
      %53 = vector.shape_cast %52 : vector<16x128xf32> to vector<2x8x128xf32>
      %cst_34 = arith.constant dense<0.000000e+00> : vector<8x128xf32>
      %54 = vector.multi_reduction <add>, %53, %cst_34 [0] : vector<2x8x128xf32> to vector<8x128xf32>
      %55 = arith.addf %49, %54 : vector<8x128xf32>
      %c0_35 = arith.constant 0 : index
      %c0_36 = arith.constant 0 : index
      %c0_37 = arith.constant 0 : index
      %56 = vector.load %arg8[%c0_35, %c0_36, %c0_37] : memref<4x8x128xf32, #tpu.memory_space<vmem>>, vector<1x8x128xf32>
      %57 = vector.shape_cast %56 : vector<1x8x128xf32> to vector<8x128xf32>
      %58 = vector.shape_cast %55 : vector<8x128xf32> to vector<1x8x128xf32>
      tpu.vector_store %arg8[%c0_35, %c0_36, %c0_37], %58 {strides = array<i32>} : memref<4x8x128xf32, #tpu.memory_space<vmem>>, vector<1x8x128xf32>,
      %c0_38 = arith.constant 0 : index
      %c1 = arith.constant 1 : index
      %c0_39 = arith.constant 0 : index
      %c0_40 = arith.constant 0 : index
      %59 = vector.load %arg3[%c0_38, %c1, %c0_39, %c0_40] : memref<1x4x16x128xf32, #tpu.memory_space<vmem>>, vector<1x1x16x128xf32>
      %60 = vector.shape_cast %59 : vector<1x1x16x128xf32> to vector<16x128xf32>
      %c1_i32_41 = arith.constant 1 : i32
      %61 = vector.broadcast %c1_i32_41 : i32 to vector<16x128xi32>
      %62 = arith.cmpi eq, %4, %61 : vector<16x128xi32>
      %63 = arith.andi %62, %22 : vector<16x128xi1>
      %cst_42 = arith.constant 0.000000e+00 : f32
      %64 = vector.broadcast %cst_42 : f32 to vector<16x128xf32>
      %65 = arith.select %22, %60, %64 : vector<16x128xi1>, vector<16x128xf32>
      %c1_43 = arith.constant 1 : index
      %c0_44 = arith.constant 0 : index
      %c0_45 = arith.constant 0 : index
      %66 = vector.load %arg7[%c1_43, %c0_44, %c0_45] : memref<4x8x128xf32, #tpu.memory_space<vmem>>, vector<1x8x128xf32>
      %67 = vector.shape_cast %66 : vector<1x8x128xf32> to vector<8x128xf32>
      %68 = vector.shape_cast %65 : vector<16x128xf32> to vector<2x8x128xf32>
      %cst_46 = arith.constant dense<0.000000e+00> : vector<8x128xf32>
      %69 = vector.multi_reduction <add>, %68, %cst_46 [0] : vector<2x8x128xf32> to vector<8x128xf32>
      %70 = arith.addf %67, %69 : vector<8x128xf32>
      %c1_47 = arith.constant 1 : index
      %c0_48 = arith.constant 0 : index
      %c0_49 = arith.constant 0 : index
      %71 = vector.load %arg7[%c1_47, %c0_48, %c0_49] : memref<4x8x128xf32, #tpu.memory_space<vmem>>, vector<1x8x128xf32>
      %72 = vector.shape_cast %71 : vector<1x8x128xf32> to vector<8x128xf32>
      %73 = vector.shape_cast %70 : vector<8x128xf32> to vector<1x8x128xf32>
      tpu.vector_store %arg7[%c1_47, %c0_48, %c0_49], %73 {strides = array<i32>} : memref<4x8x128xf32, #tpu.memory_space<vmem>>, vector<1x8x128xf32>,
      %c1_50 = arith.constant 1 : index
      %c0_51 = arith.constant 0 : index
      %c0_52 = arith.constant 0 : index
      %74 = vector.load %arg6[%c1_50, %c0_51, %c0_52] : memref<4x8x128xf32, #tpu.memory_space<vmem>>, vector<1x8x128xf32>
      %75 = vector.shape_cast %74 : vector<1x8x128xf32> to vector<8x128xf32>
      %cst_53 = arith.constant 0.000000e+00 : f32
      %76 = vector.broadcast %cst_53 : f32 to vector<16x128xf32>
      %77 = arith.select %63, %65, %76 : vector<16x128xi1>, vector<16x128xf32>
      %78 = vector.shape_cast %77 : vector<16x128xf32> to vector<2x8x128xf32>
      %cst_54 = arith.constant dense<0.000000e+00> : vector<8x128xf32>
      %79 = vector.multi_reduction <add>, %78, %cst_54 [0] : vector<2x8x128xf32> to vector<8x128xf32>
      %80 = arith.addf %75, %79 : vector<8x128xf32>
      %c1_55 = arith.constant 1 : index
      %c0_56 = arith.constant 0 : index
      %c0_57 = arith.constant 0 : index
      %81 = vector.load %arg6[%c1_55, %c0_56, %c0_57] : memref<4x8x128xf32, #tpu.memory_space<vmem>>, vector<1x8x128xf32>
      %82 = vector.shape_cast %81 : vector<1x8x128xf32> to vector<8x128xf32>
      %83 = vector.shape_cast %80 : vector<8x128xf32> to vector<1x8x128xf32>
      tpu.vector_store %arg6[%c1_55, %c0_56, %c0_57], %83 {strides = array<i32>} : memref<4x8x128xf32, #tpu.memory_space<vmem>>, vector<1x8x128xf32>,
      %c1_58 = arith.constant 1 : index
      %c0_59 = arith.constant 0 : index
      %c0_60 = arith.constant 0 : index
      %84 = vector.load %arg8[%c1_58, %c0_59, %c0_60] : memref<4x8x128xf32, #tpu.memory_space<vmem>>, vector<1x8x128xf32>
      %85 = vector.shape_cast %84 : vector<1x8x128xf32> to vector<8x128xf32>
      %cst_61 = arith.constant 1.000000e+00 : f32
      %cst_62 = arith.constant 0.000000e+00 : f32
      %86 = vector.broadcast %cst_61 : f32 to vector<16x128xf32>
      %87 = vector.broadcast %cst_62 : f32 to vector<16x128xf32>
      %88 = arith.select %63, %86, %87 : vector<16x128xi1>, vector<16x128xf32>
      %89 = vector.shape_cast %88 : vector<16x128xf32> to vector<2x8x128xf32>
      %cst_63 = arith.constant dense<0.000000e+00> : vector<8x128xf32>
      %90 = vector.multi_reduction <add>, %89, %cst_63 [0] : vector<2x8x128xf32> to vector<8x128xf32>
      %91 = arith.addf %85, %90 : vector<8x128xf32>
      %c1_64 = arith.constant 1 : index
      %c0_65 = arith.constant 0 : index
      %c0_66 = arith.constant 0 : index
      %92 = vector.load %arg8[%c1_64, %c0_65, %c0_66] : memref<4x8x128xf32, #tpu.memory_space<vmem>>, vector<1x8x128xf32>
      %93 = vector.shape_cast %92 : vector<1x8x128xf32> to vector<8x128xf32>
      %94 = vector.shape_cast %91 : vector<8x128xf32> to vector<1x8x128xf32>
      tpu.vector_store %arg8[%c1_64, %c0_65, %c0_66], %94 {strides = array<i32>} : memref<4x8x128xf32, #tpu.memory_space<vmem>>, vector<1x8x128xf32>,
      %c0_67 = arith.constant 0 : index
      %c2 = arith.constant 2 : index
      %c0_68 = arith.constant 0 : index
      %c0_69 = arith.constant 0 : index
      %95 = vector.load %arg3[%c0_67, %c2, %c0_68, %c0_69] : memref<1x4x16x128xf32, #tpu.memory_space<vmem>>, vector<1x1x16x128xf32>
      %96 = vector.shape_cast %95 : vector<1x1x16x128xf32> to vector<16x128xf32>
      %c2_i32 = arith.constant 2 : i32
      %97 = vector.broadcast %c2_i32 : i32 to vector<16x128xi32>
      %98 = arith.cmpi eq, %4, %97 : vector<16x128xi32>
      %99 = arith.andi %98, %22 : vector<16x128xi1>
      %cst_70 = arith.constant 0.000000e+00 : f32
      %100 = vector.broadcast %cst_70 : f32 to vector<16x128xf32>
      %101 = arith.select %22, %96, %100 : vector<16x128xi1>, vector<16x128xf32>
      %c2_71 = arith.constant 2 : index
      %c0_72 = arith.constant 0 : index
      %c0_73 = arith.constant 0 : index
      %102 = vector.load %arg7[%c2_71, %c0_72, %c0_73] : memref<4x8x128xf32, #tpu.memory_space<vmem>>, vector<1x8x128xf32>
      %103 = vector.shape_cast %102 : vector<1x8x128xf32> to vector<8x128xf32>
      %104 = vector.shape_cast %101 : vector<16x128xf32> to vector<2x8x128xf32>
      %cst_74 = arith.constant dense<0.000000e+00> : vector<8x128xf32>
      %105 = vector.multi_reduction <add>, %104, %cst_74 [0] : vector<2x8x128xf32> to vector<8x128xf32>
      %106 = arith.addf %103, %105 : vector<8x128xf32>
      %c2_75 = arith.constant 2 : index
      %c0_76 = arith.constant 0 : index
      %c0_77 = arith.constant 0 : index
      %107 = vector.load %arg7[%c2_75, %c0_76, %c0_77] : memref<4x8x128xf32, #tpu.memory_space<vmem>>, vector<1x8x128xf32>
      %108 = vector.shape_cast %107 : vector<1x8x128xf32> to vector<8x128xf32>
      %109 = vector.shape_cast %106 : vector<8x128xf32> to vector<1x8x128xf32>
      tpu.vector_store %arg7[%c2_75, %c0_76, %c0_77], %109 {strides = array<i32>} : memref<4x8x128xf32, #tpu.memory_space<vmem>>, vector<1x8x128xf32>,
      %c2_78 = arith.constant 2 : index
      %c0_79 = arith.constant 0 : index
      %c0_80 = arith.constant 0 : index
      %110 = vector.load %arg6[%c2_78, %c0_79, %c0_80] : memref<4x8x128xf32, #tpu.memory_space<vmem>>, vector<1x8x128xf32>
      %111 = vector.shape_cast %110 : vector<1x8x128xf32> to vector<8x128xf32>
      %cst_81 = arith.constant 0.000000e+00 : f32
      %112 = vector.broadcast %cst_81 : f32 to vector<16x128xf32>
      %113 = arith.select %99, %101, %112 : vector<16x128xi1>, vector<16x128xf32>
      %114 = vector.shape_cast %113 : vector<16x128xf32> to vector<2x8x128xf32>
      %cst_82 = arith.constant dense<0.000000e+00> : vector<8x128xf32>
      %115 = vector.multi_reduction <add>, %114, %cst_82 [0] : vector<2x8x128xf32> to vector<8x128xf32>
      %116 = arith.addf %111, %115 : vector<8x128xf32>
      %c2_83 = arith.constant 2 : index
      %c0_84 = arith.constant 0 : index
      %c0_85 = arith.constant 0 : index
      %117 = vector.load %arg6[%c2_83, %c0_84, %c0_85] : memref<4x8x128xf32, #tpu.memory_space<vmem>>, vector<1x8x128xf32>
      %118 = vector.shape_cast %117 : vector<1x8x128xf32> to vector<8x128xf32>
      %119 = vector.shape_cast %116 : vector<8x128xf32> to vector<1x8x128xf32>
      tpu.vector_store %arg6[%c2_83, %c0_84, %c0_85], %119 {strides = array<i32>} : memref<4x8x128xf32, #tpu.memory_space<vmem>>, vector<1x8x128xf32>,
      %c2_86 = arith.constant 2 : index
      %c0_87 = arith.constant 0 : index
      %c0_88 = arith.constant 0 : index
      %120 = vector.load %arg8[%c2_86, %c0_87, %c0_88] : memref<4x8x128xf32, #tpu.memory_space<vmem>>, vector<1x8x128xf32>
      %121 = vector.shape_cast %120 : vector<1x8x128xf32> to vector<8x128xf32>
      %cst_89 = arith.constant 1.000000e+00 : f32
      %cst_90 = arith.constant 0.000000e+00 : f32
      %122 = vector.broadcast %cst_89 : f32 to vector<16x128xf32>
      %123 = vector.broadcast %cst_90 : f32 to vector<16x128xf32>
      %124 = arith.select %99, %122, %123 : vector<16x128xi1>, vector<16x128xf32>
      %125 = vector.shape_cast %124 : vector<16x128xf32> to vector<2x8x128xf32>
      %cst_91 = arith.constant dense<0.000000e+00> : vector<8x128xf32>
      %126 = vector.multi_reduction <add>, %125, %cst_91 [0] : vector<2x8x128xf32> to vector<8x128xf32>
      %127 = arith.addf %121, %126 : vector<8x128xf32>
      %c2_92 = arith.constant 2 : index
      %c0_93 = arith.constant 0 : index
      %c0_94 = arith.constant 0 : index
      %128 = vector.load %arg8[%c2_92, %c0_93, %c0_94] : memref<4x8x128xf32, #tpu.memory_space<vmem>>, vector<1x8x128xf32>
      %129 = vector.shape_cast %128 : vector<1x8x128xf32> to vector<8x128xf32>
      %130 = vector.shape_cast %127 : vector<8x128xf32> to vector<1x8x128xf32>
      tpu.vector_store %arg8[%c2_92, %c0_93, %c0_94], %130 {strides = array<i32>} : memref<4x8x128xf32, #tpu.memory_space<vmem>>, vector<1x8x128xf32>,
      %c0_95 = arith.constant 0 : index
      %c3 = arith.constant 3 : index
      %c0_96 = arith.constant 0 : index
      %c0_97 = arith.constant 0 : index
      %131 = vector.load %arg3[%c0_95, %c3, %c0_96, %c0_97] : memref<1x4x16x128xf32, #tpu.memory_space<vmem>>, vector<1x1x16x128xf32>
      %132 = vector.shape_cast %131 : vector<1x1x16x128xf32> to vector<16x128xf32>
      %c3_i32 = arith.constant 3 : i32
      %133 = vector.broadcast %c3_i32 : i32 to vector<16x128xi32>
      %134 = arith.cmpi sge, %4, %133 : vector<16x128xi32>
      %135 = arith.andi %134, %22 : vector<16x128xi1>
      %cst_98 = arith.constant 0.000000e+00 : f32
      %136 = vector.broadcast %cst_98 : f32 to vector<16x128xf32>
      %137 = arith.select %22, %132, %136 : vector<16x128xi1>, vector<16x128xf32>
      %c3_99 = arith.constant 3 : index
      %c0_100 = arith.constant 0 : index
      %c0_101 = arith.constant 0 : index
      %138 = vector.load %arg7[%c3_99, %c0_100, %c0_101] : memref<4x8x128xf32, #tpu.memory_space<vmem>>, vector<1x8x128xf32>
      %139 = vector.shape_cast %138 : vector<1x8x128xf32> to vector<8x128xf32>
      %140 = vector.shape_cast %137 : vector<16x128xf32> to vector<2x8x128xf32>
      %cst_102 = arith.constant dense<0.000000e+00> : vector<8x128xf32>
      %141 = vector.multi_reduction <add>, %140, %cst_102 [0] : vector<2x8x128xf32> to vector<8x128xf32>
      %142 = arith.addf %139, %141 : vector<8x128xf32>
      %c3_103 = arith.constant 3 : index
      %c0_104 = arith.constant 0 : index
      %c0_105 = arith.constant 0 : index
      %143 = vector.load %arg7[%c3_103, %c0_104, %c0_105] : memref<4x8x128xf32, #tpu.memory_space<vmem>>, vector<1x8x128xf32>
      %144 = vector.shape_cast %143 : vector<1x8x128xf32> to vector<8x128xf32>
      %145 = vector.shape_cast %142 : vector<8x128xf32> to vector<1x8x128xf32>
      tpu.vector_store %arg7[%c3_103, %c0_104, %c0_105], %145 {strides = array<i32>} : memref<4x8x128xf32, #tpu.memory_space<vmem>>, vector<1x8x128xf32>,
      %c3_106 = arith.constant 3 : index
      %c0_107 = arith.constant 0 : index
      %c0_108 = arith.constant 0 : index
      %146 = vector.load %arg6[%c3_106, %c0_107, %c0_108] : memref<4x8x128xf32, #tpu.memory_space<vmem>>, vector<1x8x128xf32>
      %147 = vector.shape_cast %146 : vector<1x8x128xf32> to vector<8x128xf32>
      %cst_109 = arith.constant 0.000000e+00 : f32
      %148 = vector.broadcast %cst_109 : f32 to vector<16x128xf32>
      %149 = arith.select %135, %137, %148 : vector<16x128xi1>, vector<16x128xf32>
      %150 = vector.shape_cast %149 : vector<16x128xf32> to vector<2x8x128xf32>
      %cst_110 = arith.constant dense<0.000000e+00> : vector<8x128xf32>
      %151 = vector.multi_reduction <add>, %150, %cst_110 [0] : vector<2x8x128xf32> to vector<8x128xf32>
      %152 = arith.addf %147, %151 : vector<8x128xf32>
      %c3_111 = arith.constant 3 : index
      %c0_112 = arith.constant 0 : index
      %c0_113 = arith.constant 0 : index
      %153 = vector.load %arg6[%c3_111, %c0_112, %c0_113] : memref<4x8x128xf32, #tpu.memory_space<vmem>>, vector<1x8x128xf32>
      %154 = vector.shape_cast %153 : vector<1x8x128xf32> to vector<8x128xf32>
      %155 = vector.shape_cast %152 : vector<8x128xf32> to vector<1x8x128xf32>
      tpu.vector_store %arg6[%c3_111, %c0_112, %c0_113], %155 {strides = array<i32>} : memref<4x8x128xf32, #tpu.memory_space<vmem>>, vector<1x8x128xf32>,
      %c3_114 = arith.constant 3 : index
      %c0_115 = arith.constant 0 : index
      %c0_116 = arith.constant 0 : index
      %156 = vector.load %arg8[%c3_114, %c0_115, %c0_116] : memref<4x8x128xf32, #tpu.memory_space<vmem>>, vector<1x8x128xf32>
      %157 = vector.shape_cast %156 : vector<1x8x128xf32> to vector<8x128xf32>
      %cst_117 = arith.constant 1.000000e+00 : f32
      %cst_118 = arith.constant 0.000000e+00 : f32
      %158 = vector.broadcast %cst_117 : f32 to vector<16x128xf32>
      %159 = vector.broadcast %cst_118 : f32 to vector<16x128xf32>
      %160 = arith.select %135, %158, %159 : vector<16x128xi1>, vector<16x128xf32>
      %161 = vector.shape_cast %160 : vector<16x128xf32> to vector<2x8x128xf32>
      %cst_119 = arith.constant dense<0.000000e+00> : vector<8x128xf32>
      %162 = vector.multi_reduction <add>, %161, %cst_119 [0] : vector<2x8x128xf32> to vector<8x128xf32>
      %163 = arith.addf %157, %162 : vector<8x128xf32>
      %c3_120 = arith.constant 3 : index
      %c0_121 = arith.constant 0 : index
      %c0_122 = arith.constant 0 : index
      %164 = vector.load %arg8[%c3_120, %c0_121, %c0_122] : memref<4x8x128xf32, #tpu.memory_space<vmem>>, vector<1x8x128xf32>
      %165 = vector.shape_cast %164 : vector<1x8x128xf32> to vector<8x128xf32>
      %166 = vector.shape_cast %163 : vector<8x128xf32> to vector<1x8x128xf32>
      tpu.vector_store %arg8[%c3_120, %c0_121, %c0_122], %166 {strides = array<i32>} : memref<4x8x128xf32, #tpu.memory_space<vmem>>, vector<1x8x128xf32>,
    } else {
    }
    %c0_i32_6 = arith.constant 0 : i32
    %15 = arith.cmpi eq, %arg2, %c0_i32_6 : i32
    %16 = arith.extui %15 : i1 to i32
    %c0_i32_7 = arith.constant 0 : i32
    %17 = arith.cmpi ne, %16, %c0_i32_7 : i32
    scf.if %17 {
      %c0_8 = arith.constant 0 : index
      %c0_9 = arith.constant 0 : index
      %c0_10 = arith.constant 0 : index
      %18 = vector.load %arg6[%c0_8, %c0_9, %c0_10] : memref<4x8x128xf32, #tpu.memory_space<vmem>>, vector<4x8x128xf32>
      %cst = arith.constant dense<0.000000e+00> : vector<4x8xf32>
      %19 = vector.multi_reduction <add>, %18, %cst [2] : vector<4x8x128xf32> to vector<4x8xf32>
      %cst_11 = arith.constant dense<0.000000e+00> : vector<4xf32>
      %20 = vector.multi_reduction <add>, %19, %cst_11 [1] : vector<4x8xf32> to vector<4xf32>
      %21 = vector.shape_cast %20 : vector<4xf32> to vector<4x1xf32>
      %c0_12 = arith.constant 0 : index
      %c0_13 = arith.constant 0 : index
      %c0_14 = arith.constant 0 : index
      %22 = vector.load %arg7[%c0_12, %c0_13, %c0_14] : memref<4x8x128xf32, #tpu.memory_space<vmem>>, vector<4x8x128xf32>
      %cst_15 = arith.constant dense<0.000000e+00> : vector<4x8xf32>
      %23 = vector.multi_reduction <add>, %22, %cst_15 [2] : vector<4x8x128xf32> to vector<4x8xf32>
      %cst_16 = arith.constant dense<0.000000e+00> : vector<4xf32>
      %24 = vector.multi_reduction <add>, %23, %cst_16 [1] : vector<4x8xf32> to vector<4xf32>
      %25 = vector.shape_cast %24 : vector<4xf32> to vector<4x1xf32>
      %c0_17 = arith.constant 0 : index
      %c0_18 = arith.constant 0 : index
      %c0_19 = arith.constant 0 : index
      %26 = vector.load %arg8[%c0_17, %c0_18, %c0_19] : memref<4x8x128xf32, #tpu.memory_space<vmem>>, vector<4x8x128xf32>
      %cst_20 = arith.constant dense<0.000000e+00> : vector<4x8xf32>
      %27 = vector.multi_reduction <add>, %26, %cst_20 [2] : vector<4x8x128xf32> to vector<4x8xf32>
      %cst_21 = arith.constant dense<0.000000e+00> : vector<4xf32>
      %28 = vector.multi_reduction <add>, %27, %cst_21 [1] : vector<4x8xf32> to vector<4xf32>
      %29 = vector.shape_cast %28 : vector<4xf32> to vector<4x1xf32>
      %30 = tpu.concatenate %21, %25, %29 in 1 : vector<4x1xf32>, vector<4x1xf32>, vector<4x1xf32> -> vector<4x3xf32>
      %c0_22 = arith.constant 0 : index
      %c0_23 = arith.constant 0 : index
      %c0_24 = arith.constant 0 : index
      %31 = vector.load %arg5[%c0_22, %c0_23, %c0_24] : memref<1x4x3xf32, #tpu.memory_space<vmem>>, vector<1x4x3xf32>
      %32 = vector.shape_cast %31 : vector<1x4x3xf32> to vector<4x3xf32>
      %33 = vector.shape_cast %30 : vector<4x3xf32> to vector<1x4x3xf32>
      tpu.vector_store %arg5[%c0_22, %c0_23, %c0_24], %33 {strides = array<i32>} : memref<1x4x3xf32, #tpu.memory_space<vmem>>, vector<1x4x3xf32>,
    } else {
    }
    return
  }
  func.func @transform_0(%arg0: i32, %arg1: i32, %arg2: i32) -> (i32, i32, i32, i32) {
    %c1_i32 = arith.constant 1 : i32
    %0 = arith.muli %arg1, %c1_i32 : i32
    %1 = arith.addi %0, %arg2 : i32
    %c1_i32_0 = arith.constant 1 : i32
    %2 = arith.minsi %1, %c1_i32_0 : i32
    %c0_i32 = arith.constant 0 : i32
    %c0_i32_1 = arith.constant 0 : i32
    %c0_i32_2 = arith.constant 0 : i32
    return %arg0, %c0_i32, %2, %c0_i32_1 : i32, i32, i32, i32
  }
  func.func @transform_1(%arg0: i32, %arg1: i32, %arg2: i32) -> (i32, i32, i32) {
    %c1_i32 = arith.constant 1 : i32
    %0 = arith.muli %arg1, %c1_i32 : i32
    %1 = arith.addi %0, %arg2 : i32
    %c1_i32_0 = arith.constant 1 : i32
    %2 = arith.minsi %1, %c1_i32_0 : i32
    %c0_i32 = arith.constant 0 : i32
    %c0_i32_1 = arith.constant 0 : i32
    return %arg0, %2, %c0_i32 : i32, i32, i32
  }
  func.func @transform_2(%arg0: i32, %arg1: i32, %arg2: i32) -> (i32, i32, i32) {
    %c2_i32 = arith.constant 2 : i32
    %0 = arith.muli %arg0, %c2_i32 : i32
    %1 = arith.addi %0, %arg1 : i32
    %c0_i32 = arith.constant 0 : i32
    %c0_i32_0 = arith.constant 0 : i32
    %c0_i32_1 = arith.constant 0 : i32
    return %1, %c0_i32, %c0_i32_0 : i32, i32, i32
  }
}

</mosaic_0001>

<bundles_post_ra>
// kernel: tpu_custom_call.1
= control target key start
LH: loop header
LB: loop body
LE: loop exit
PB: predicated region body
PF: predicated region fallthrough
CT: control target
= control target key end

     0   :  { %s1246_s9 = smov 0   ;;  %s1248_s10 = smov 0   ;;  %s1587_s0 = inlined_call_operand.vmem [shape: f32[2,4,20,128], index: 0, kind: input, shape index: {}]   ;;  %s1588_s1 = inlined_call_operand.vmem [shape: s32[2,20,128], index: 1, kind: input, shape index: {}]   ;;  %s1589_s2 = inlined_call_operand.vmem [shape: f32[4,4,3], index: 2, kind: output, shape index: {}]  }
   0x1   :  { %s1250_s11 = smov 0   ;;  %s1252_s12 = smov 0  }
   0x2   :  { %s1254_s13 = smov 0   ;;  %s1256_s14 = smov 0  }
   0x3   :  { %s1258_s15 = smov 0  }
   0x4 LB: > { %s27_s16 = sadd.s32 1, %s1186_s13  ;;  %s31_s17 = sadd.s32 1, %s1190_s14  ;;  %s1194_s15 = sphi %s1258_s15, %s12_s15   ;;  %s1190_s14 = sphi %s1256_s14, %s1612_s14   ;;  %s1186_s13 = sphi %s1254_s13, %s1611_s13   ;;  %s1182_s12 = sphi %s1252_s12, %s1610_s12   ;;  %s1178_s11 = sphi %s1250_s11, %s1609_s11   ;;  %s1174_s10 = sphi %s1248_s10, %s1608_s10   ;;  %s1170_s9 = sphi %s1246_s9, %s1607_s9  }
   0x5   : > { %p29_p0 = scmp.ge.s32.totalorder %s27_s16, 2  ;;  %p36_p1 = scmp.lt.s32.totalorder %s1186_s13, 1 }
   0x6   : > { %p53_p2 = scmp.ne.s32.totalorder %s1174_s10, %s1170_s9  ;;  %p54_p5 = scmp.eq.s32.totalorder %s1194_s15, 0 }
   0x7   : > { %s1614_s16 = smov (%p29_p0, %s27_s16), 0  ;;  %s1616_s17 = smov (!%p29_p0, %s31_s17), %s1190_s14 }
   0x8   : > { %s37_s18 = scalar_select %p36_p1, %s1186_s13, 1 }
   0x9   : > { %p33_p3 = scmp.ge.s32.totalorder %s1616_s17, 2  ;;  %p39_p4 = scmp.lt.s32.totalorder %s1614_s16, 1 }
   0xa   : > { %p55_p6 = por %p54_p5, %p53_p2  ;;  %s46_s23 = sadd.s32 1, %s1174_s10 }
   0xb   : > { %s1618_s17 = smov (%p33_p3, %s1616_s17), 0  ;;  %p942_p8 = scmp.ge.s32.totalorder %s1194_s15, 4 }
   0xc   : > { %s40_s19 = scalar_select %p39_p4, %s1614_s16, 1 }
   0xd   : > { %s41_s20 = ssub.s32 %s1190_s14, %s1618_s17 }
   0xe   : > { %s42_s21 = ssub.s32 %s37_s18, %s40_s19  ;;  %143 = sbr.rel (%p942_p8) target bundleno = 63 (0x3f), region = 16 }
   0xf   : > { %s43_s22 = sor.u32 %s42_s21, %s41_s20 }
  0x10   : > { %p44_p7 = scmp.eq.s32.totalorder %s43_s22, 0 }
  0x12   : > { %s1299_s24 = scalar_select %p44_p7, %s1174_s10, %s46_s23  }
  0x13   : > { %146 = sbr.rel (!%p55_p6) target bundleno = 63 (0x3f), region = 20  ;;  %s148_s25 = sand.u32 (%p55_p6), 1, %s1174_s10  }
  0x14   : > { %s944_s26 = sshll.u32 (%p55_p6), %s37_s18, 1  ;;  %s943_s27 = sshll.u32 (%p55_p6), %s148_s25, 6 }
  0x15   : > { %s155_s28 = ssub.s32 (%p55_p6), 3, %s944_s26  ;;  %s983_s29 = smul.u32 (%p55_p6), 12, %s1190_s14 }
  0x16   : > { %p156_p9 = scmp.lt.s32.totalorder (%p55_p6), %s155_s28, 2  ;;  %s1312_s8 = scalar_lea.vmem (%p55_p6), [#allocation5], %s943_s27  }
  0x17   : > { %s161_s30 = sadd.s32 (%p55_p6), %s983_s29, %s944_s26 }
  0x18   : > { %s1620_s28 = smov (!%p156_p9, %s155_s28), 2  ;;  %s947_s4 = sshll.u32 %s161_s30, 3 }
  0x19   : > { %s945_s3 = sshll.u32 %s1620_s28, 9  ;;  %s1310_s7 = scalar_lea.vmem %s1587_s0, %s947_s4  }
  0x1a   : > { %p948_p10 = scmp.eq.s32.totalorder %s945_s3, 0 }
  0x1b   : > { %s1315_s18 = sshrl.u32 (!%p948_p10), %s1620_s28, 1 }
  0x1c   : > { %166 = sbr.rel (%p948_p10) target bundleno = 63 (0x3f), region = 24  ;;  %p949_p11 = scmp.le.s32.totalorder (!%p948_p10), %s1315_s18, 0 }
  0x21   : > { %873 = sbr.rel (%p949_p11) target bundleno = 46 (0x2e), region = 160  ;;  %s1590_s19 = smov (!%p949_p11), %s1312_s8 }
  0x22   : > { %s1591_s20 = smov (!%p949_p11), %s1310_s7  ;;  %s1324_s21 = smov (!%p949_p11), 0  }
  0x23   : > { %s1326_s22 = smov (!%p949_p11), 0  }
  0x26 LB: >> { %v249_v0 = vld [vmem:[%s1202_s20] sm:$0xff]  ;;  %v251_v1 = vld [vmem:[%s1202_s20 + $0x8] sm:$0xff]  ;;  %v253_v2 = vld [vmem:[%s1202_s20 + $0x18] sm:$0xff]  ;;  %s265_s23 = sadd.s32 1, %s1206_s21  ;;  %s243_s22 = sadd.s32 1, %s1210_s22   ;;  %s1210_s22 = sphi %s1326_s22, %s243_s22   ;;  %s1206_s21 = sphi %s1324_s21, %s1592_s21   ;;  %s1202_s20 = sphi %s1591_s20, %s270_s20   ;;  %s1198_s19 = sphi %s1590_s19, %s271_s19  }
  0x27   : >> { %250 = vst [vmem:[%s1198_s19] sm:$0xff] %v249_v0  ;;  %252 = vst [vmem:[%s1198_s19 + $0x8] sm:$0xff] %v251_v1  ;;  %v255_v3 = vld [vmem:[%s1202_s20 + $0x20] sm:$0xff]  ;;  %v257_v4 = vld [vmem:[%s1202_s20 + $0x30] sm:$0xff]  ;;  %p266_p12 = scmp.ge.s32.totalorder %s265_s23, %s1315_s18  ;;  %p242_p13 = scmp.ge.s32.totalorder %s243_s22, %s1315_s18 }
  0x28   : >> { %254 = vst [vmem:[%s1198_s19 + $0x10] sm:$0xff] %v253_v2  ;;  %v259_v5 = vld [vmem:[%s1202_s20 + $0x38] sm:$0xff]  ;;  %256 = vst [vmem:[%s1198_s19 + $0x18] sm:$0xff] %v255_v3  ;;  %v261_v6 = vld [vmem:[%s1202_s20 + $0x48] sm:$0xff] }
  0x29   : >> { %258 = vst [vmem:[%s1198_s19 + $0x20] sm:$0xff] %v257_v4  ;;  %260 = vst [vmem:[%s1198_s19 + $0x28] sm:$0xff] %v259_v5  ;;  %v263_v7 = vld [vmem:[%s1202_s20 + $0x50] sm:$0xff]  ;;  %s1622_s23 = smov (%p266_p12, %s265_s23), 0  ;;  %245 = sbr.rel (!%p242_p13) target bundleno = 38 (0x26), region = 166 }
  0x2a   : >> { %262 = vst [vmem:[%s1198_s19 + $0x30] sm:$0xff] %v261_v6  ;;  %264 = vst [vmem:[%s1198_s19 + $0x38] sm:$0xff] %v263_v7  ;;  %s950_s25 = sshll.u32 %s1622_s23, 4  ;;  %s1592_s21 = smov %s1622_s23 }
  0x2b   : >> { %s270_s20 = scalar_lea.vmem %s1310_s7, %s950_s25   ;;  %s271_s19 = scalar_lea.vmem %s1312_s8, %s950_s25 [#allocation5]  }
  0x2e PF: > { %s1345_s26 = sand.u32 1, %s1620_s28   ;;  %s981_s27 = sshll.u32 %s1315_s18, 4 }
  0x2f   : > { %s1349_s29 = scalar_lea.vmem %s1310_s7, %s981_s27   ;;  %s1352_s30 = scalar_lea.vmem %s1312_s8, %s981_s27 [#allocation5]  }
  0x30   : > { %p955_p0 = scmp.le.s32.totalorder %s1345_s26, 0 }
  0x31   : > { %s1593_s3 = smov (!%p955_p0), %s1352_s30  ;;  %s1594_s4 = smov (!%p955_p0), %s1349_s29 }
  0x32   : > { %887 = sbr.rel (%p955_p0) target bundleno = 63 (0x3f), region = 171  ;;  %s1220_s5 = smov (!%p955_p0), 0  }
  0x33   : > { %s1224_s6 = smov (!%p955_p0), 0  }
  0x37 LB: >> { %v288_v8 = vld [vmem:[%s1218_s4] sm:$0xff]  ;;  %v290_v9 = vld [vmem:[%s1218_s4 + $0x18] sm:$0xff]  ;;  %v292_v10 = vld [vmem:[%s1218_s4 + $0x30] sm:$0xff]  ;;  %s296_s28 = sadd.s32 1, %s1222_s5  ;;  %s282_s6 = sadd.s32 1, %s1226_s6   ;;  %s1226_s6 = sphi %s1224_s6, %s282_s6   ;;  %s1222_s5 = sphi %s1220_s5, %s1221_s5   ;;  %s1218_s4 = sphi %s1594_s4, %s301_s4   ;;  %s1214_s3 = sphi %s1593_s3, %s302_s3  }
  0x38   : >> { %289 = vst [vmem:[%s1214_s3] sm:$0xff] %v288_v8  ;;  %291 = vst [vmem:[%s1214_s3 + $0x10] sm:$0xff] %v290_v9  ;;  %v294_v11 = vld [vmem:[%s1218_s4 + $0x48] sm:$0xff]  ;;  %p297_p1 = scmp.ge.s32.totalorder %s296_s28, %s1345_s26  ;;  %p281_p2 = scmp.ge.s32.totalorder %s282_s6, %s1345_s26 }
  0x39   : >> { %293 = vst [vmem:[%s1214_s3 + $0x20] sm:$0xff] %v292_v10  ;;  %295 = vst [vmem:[%s1214_s3 + $0x30] sm:$0xff] %v294_v11 }
  0x3a   : >> { %s1624_s28 = smov (%p297_p1, %s296_s28), 0  ;;  %284 = sbr.rel (!%p281_p2) target bundleno = 55 (0x37), region = 177 }
  0x3b   : >> { %s956_s7 = sshll.u32 %s1624_s28, 3  ;;  %s1221_s5 = smov %s1624_s28  }
  0x3c   : >> { %s301_s4 = scalar_lea.vmem %s1349_s29, %s956_s7   ;;  %s302_s3 = scalar_lea.vmem %s1352_s30, %s956_s7 [#allocation5]  }
  0x3f PF: > { %p958_p3 = scmp.ge.s32.totalorder %s1194_s15, 1  ;;  %p334_p4 = scmp.lt.s32.totalorder %s1194_s15, 5 }
  0x41   : > { %p335_p5 = pnand %p958_p3, %p334_p4 }
  0x42   : > { %s341_s8 = sand.u32 (!%p335_p5), 1, %s1170_s9   ;;  %p388_p6 = scmp.lt.s32.totalorder (!%p335_p5), %s1178_s11, 1 }
  0x43   : > { %338 = sbr.rel (%p335_p5) target bundleno = 433 (0x1b1), region = 76  ;;  %s1375_s18 = sshll.u32 (!%p335_p5), %s341_s8, 6 }
  0x44   : > { %p395_p7 = scmp.lt.s32.totalorder (!%p335_p5), %s1182_s12, 1  ;;  %s962_s9 = sshll.u32 (!%p335_p5), %s1182_s12, 1 }
  0x45   : > { %s412_s21 = sadd.s32 (!%p335_p5), %s1178_s11, %s962_s9  ;;  %s964_s23 = sshll.u32 (!%p335_p5), %s1178_s11, 4 }
  0x46   : > { %p413_p9 = scmp.lt.s32.totalorder (!%p335_p5), %s412_s21, 3  ;;  %s1389_s26 = sadd.s32 (!%p335_p5), 16, %s964_s23 }
  0x47   : > { %p965_p10 = scmp.gt.s32.totalorder (!%p335_p5), %s1389_s26, 20 }
  0x48   : > { %v1228_v12 = vmov 0.0   ;;  %s389_s19 = scalar_select %p388_p6, %s1178_s11, 1 }
  0x49   : > { %423 = vst [vmem:[#allocation2 + $0x10] sm:$0xff] %v1228_v12  ;;  %424 = vst [vmem:[#allocation2] sm:$0xff] %v1228_v12  ;;  %s1626_s12 = smov (!%p395_p7, %s1182_s12), 1  ;;  %s1630_s21 = smov (!%p413_p9, %s412_s21), 3 }
  0x4a   : > { %425 = vst [vmem:[#allocation2 + $0x18] sm:$0xff] %v1228_v12  ;;  %426 = vst [vmem:[#allocation2 + $0x8] sm:$0xff] %v1228_v12  ;;  %s960_s20 = sshll.u32 %s389_s19, 1  ;;  %s984_s22 = smul.u32 3, %s1626_s12 }
  0x4b   : > { %427 = vst [vmem:[#allocation3] sm:$0xff] %v1228_v12  ;;  %428 = vst [vmem:[#allocation3 + $0x18] sm:$0xff] %v1228_v12  ;;  %p397_p8 = scmp.lt.s32.totalorder %s960_s20, 2  ;;  %s963_s29 = sshll.u32 %s1630_s21, 2 }
  0x4c   : > { %429 = vst [vmem:[#allocation3 + $0x8] sm:$0xff] %v1228_v12  ;;  %430 = vst [vmem:[#allocation3 + $0x10] sm:$0xff] %v1228_v12  ;;  %s1397_s28 = scalar_lea.vmem %s1589_s2, %s963_s29  ;;  %s1404_s12 = scalar_lea.vmem [#allocation5], %s1375_s18 }
  0x4d   : > { %431 = vst [vmem:[#allocation4] sm:$0xff] %v1228_v12  ;;  %432 = vst [vmem:[#allocation4 + $0x8] sm:$0xff] %v1228_v12  ;;  %s1628_s20 = smov (!%p397_p8, %s960_s20), 2  ;;  %443 = sbr.rel (%p965_p10) target bundleno = 99 (0x63), region = 88 }
  0x4e   : > { %433 = vst [vmem:[#allocation4 + $0x10] sm:$0xff] %v1228_v12  ;;  %434 = vst [vmem:[#allocation4 + $0x18] sm:$0xff] %v1228_v12  ;;  %s400_s25 = sadd.s32 %s984_s22, %s1628_s20 }
  0x4f   : > { %s961_s27 = sshll.u32 %s400_s25, 3 }
  0x50   : > { %s402_s4 = scalar_lea.vmem %s1588_s1, %s961_s27 }
  0x51   : > { %v1399_v13 = vld [vmem:[%s402_s4] sm:$0xff]  ;;  %v1401_v14 = vld [vmem:[%s402_s4 + $0x8] sm:$0xff] }
  0x52   : > { %v444_v15 = vld [vmem:[%s1404_s12] sm:$0xff]  ;;  %v445_v16 = vld [vmem:[%s1404_s12 + $0x8] sm:$0xff]  ;;  %vm446_vm0 = vcmp.eq.s32.totalorder %v1399_v13, 0  ;;  %vm447_vm1 = vcmp.eq.s32.totalorder %v1401_v14, 0  ;;  %v452_v19 = vld [vmem:[#allocation2 + $0x10] sm:$0xff]  ;;  %v1229_v22 = vmov 0.0  }
  0x53   : > { %v448_v17 = vld [vmem:[#allocation3] sm:$0xff]  ;;  %v449_v18 = vadd.f32 %v445_v16, %v444_v15  ;;  %v453_v20 = vsel %vm446_vm0, %v444_v15, 0.0  ;;  %v454_v21 = vsel %vm447_vm1, %v445_v16, 0.0  ;;  %v459_v23 = vsel %vm446_vm0, 1.0, %v1229_v22  ;;  %v966_v24 = vld [vmem:[%s1404_s12 + $0x10] sm:$0xff]  ;;  %v967_v28 = vld [vmem:[%s1404_s12 + $0x18] sm:$0xff] }
  0x54   : > { %v455_v25 = vadd.f32 %v454_v21, %v453_v20  ;;  %v458_v26 = vld [vmem:[#allocation4] sm:$0xff]  ;;  %v460_v27 = vsel %vm447_vm1, 1.0, %v1229_v22  ;;  %v470_v29 = vld [vmem:[#allocation3 + $0x18] sm:$0xff]  ;;  %vm467_vm2 = vcmp.eq.s32.totalorder %v1399_v13, 1  ;;  %vm468_vm3 = vcmp.eq.s32.totalorder %v1401_v14, 1  ;;  %v969_v35 = vld [vmem:[%s1404_s12 + $0x28] sm:$0xff] }
  0x55   : > { %v450_v30 = vadd.f32 %v449_v18, %v448_v17  ;;  %v461_v31 = vadd.f32 %v460_v27, %v459_v23  ;;  %v471_v32 = vadd.f32 %v967_v28, %v966_v24  ;;  %v476_v33 = vsel %vm467_vm2, %v966_v24, 0.0  ;;  %v968_v34 = vld [vmem:[%s1404_s12 + $0x20] sm:$0xff]  ;;  %v482_v39 = vld [vmem:[#allocation4 + $0x8] sm:$0xff]  ;;  %v970_v47 = vld [vmem:[%s1404_s12 + $0x30] sm:$0xff] }
  0x56   : > { %v456_v36 = vadd.f32 %v455_v25, %v452_v19  ;;  %v475_v37 = vld [vmem:[#allocation2] sm:$0xff]  ;;  %v477_v38 = vsel %vm468_vm3, %v967_v28, 0.0  ;;  %v483_v40 = vsel %vm467_vm2, 1.0, %v1229_v22  ;;  %v484_v41 = vsel %vm468_vm3, 1.0, %v1229_v22  ;;  %v494_v46 = vld [vmem:[#allocation3 + $0x8] sm:$0xff]  ;;  %v971_v48 = vld [vmem:[%s1404_s12 + $0x38] sm:$0xff] }
  0x57   : > { %451 = vst [vmem:[#allocation3] sm:$0xff] %v450_v30  ;;  %v462_v42 = vadd.f32 %v461_v31, %v458_v26  ;;  %v472_v43 = vadd.f32 %v471_v32, %v470_v29  ;;  %v478_v44 = vadd.f32 %v477_v38, %v476_v33  ;;  %v485_v45 = vadd.f32 %v484_v41, %v483_v40  ;;  %v518_v50 = vld [vmem:[#allocation3 + $0x10] sm:$0xff]  ;;  %v499_v54 = vld [vmem:[#allocation2 + $0x18] sm:$0xff]  ;;  %v523_v1 = vld [vmem:[#allocation2 + $0x8] sm:$0xff] }
  0x58   : > { %457 = vst [vmem:[#allocation2 + $0x10] sm:$0xff] %v456_v36  ;;  %v495_v49 = vadd.f32 %v969_v35, %v968_v34  ;;  %vm491_vm4 = vcmp.eq.s32.totalorder %v1399_v13, 2  ;;  %vm492_vm5 = vcmp.eq.s32.totalorder %v1401_v14, 2  ;;  %v519_v51 = vadd.f32 %v971_v48, %v970_v47  ;;  %v506_v59 = vld [vmem:[#allocation4 + $0x10] sm:$0xff]  ;;  %v530_v7 = vld [vmem:[#allocation4 + $0x18] sm:$0xff] }
  0x59   : > { %463 = vst [vmem:[#allocation4] sm:$0xff] %v462_v42  ;;  %473 = vst [vmem:[#allocation3 + $0x18] sm:$0xff] %v472_v43  ;;  %v479_v52 = vadd.f32 %v478_v44, %v475_v37  ;;  %v486_v53 = vadd.f32 %v485_v45, %v482_v39  ;;  %v500_v55 = vsel %vm491_vm4, %v968_v34, 0.0  ;;  %v501_v56 = vsel %vm492_vm5, %v969_v35, 0.0 }
  0x5a   : > { %v496_v57 = vadd.f32 %v495_v49, %v494_v46  ;;  %v502_v58 = vadd.f32 %v501_v56, %v500_v55  ;;  %v507_v60 = vsel %vm491_vm4, 1.0, %v1229_v22  ;;  %v508_v61 = vsel %vm492_vm5, 1.0, %v1229_v22 }
  0x5b   : > { %480 = vst [vmem:[#allocation2] sm:$0xff] %v479_v52  ;;  %487 = vst [vmem:[#allocation4 + $0x8] sm:$0xff] %v486_v53  ;;  %v509_v62 = vadd.f32 %v508_v61, %v507_v60  ;;  %v520_v63 = vadd.f32 %v519_v51, %v518_v50  ;;  %vm515_vm6 = vcmp.ge.s32.totalorder %v1399_v13, 3  ;;  %vm516_vm7 = vcmp.ge.s32.totalorder %v1401_v14, 3 }
  0x5c   : > { %497 = vst [vmem:[#allocation3 + $0x8] sm:$0xff] %v496_v57  ;;  %v503_v0 = vadd.f32 %v502_v58, %v499_v54  ;;  %v524_v2 = vsel %vm515_vm6, %v970_v47, 0.0  ;;  %v525_v3 = vsel %vm516_vm7, %v971_v48, 0.0  ;;  %v531_v4 = vsel %vm515_vm6, 1.0, %v1229_v22 }
  0x5d   : > { %v510_v5 = vadd.f32 %v509_v62, %v506_v59  ;;  %521 = vst [vmem:[#allocation3 + $0x10] sm:$0xff] %v520_v63  ;;  %v526_v6 = vadd.f32 %v525_v3, %v524_v2  ;;  %v532_v8 = vsel %vm516_vm7, 1.0, %v1229_v22 }
  0x5e   : > { %504 = vst [vmem:[#allocation2 + $0x18] sm:$0xff] %v503_v0  ;;  %v533_v9 = vadd.f32 %v532_v8, %v531_v4 }
  0x5f   : > { %511 = vst [vmem:[#allocation4 + $0x10] sm:$0xff] %v510_v5  ;;  %v527_v10 = vadd.f32 %v526_v6, %v523_v1 }
  0x60   : > { %v534_v11 = vadd.f32 %v533_v9, %v530_v7 }
  0x61   : > { %528 = vst [vmem:[#allocation2 + $0x8] sm:$0xff] %v527_v10 }
  0x62   : > { %535 = vst [vmem:[#allocation4 + $0x18] sm:$0xff] %v534_v11 }
  0x63 PF: > { %p972_p11 = scmp.le.s32.totalorder %s1389_s26, 20 }
  0x65   : > { %539 = sbr.rel (%p972_p11) target bundleno = 129 (0x81), region = 92 }
  0x6a   : > { %v540_v12 = vlaneseq  ;;  %v543_v15 = vstv %s964_s23  ;;  %v548_v19 = vld [vmem:[%s1404_s12] sm:$0xff]  ;;  %vm550_vm8 = vcmp.eq.s32.totalorder %v1399_v13, 0  ;;  %vm551_vm9 = vcmp.eq.s32.totalorder %v1401_v14, 0  ;;  %v973_v20 = vld [vmem:[%s1404_s12 + $0x10] sm:$0xff]  ;;  %v549_v24 = vld [vmem:[%s1404_s12 + $0x8] sm:$0xff] }
  0x6b   : > { %v975_v21 = vld [vmem:[%s1404_s12 + $0x20] sm:$0xff]  ;;  %vm575_vm10 = vcmp.eq.s32.totalorder %v1399_v13, 1  ;;  %vm576_vm11 = vcmp.eq.s32.totalorder %v1401_v14, 1  ;;  %vm603_vm12 = vcmp.eq.s32.totalorder %v1399_v13, 2  ;;  %v977_v22 = vld [vmem:[%s1404_s12 + $0x30] sm:$0xff]  ;;  %v974_v25 = vld [vmem:[%s1404_s12 + $0x18] sm:$0xff] }
  0x6c   : > { %v541_v16 = vshrl.u32 %v540_v12, 7  ;;  %vm604_vm14 = vcmp.eq.s32.totalorder %v1401_v14, 2  ;;  %vm631_vm15 = vcmp.ge.s32.totalorder %v1399_v13, 3  ;;  %vm632_vm1 = vcmp.ge.s32.totalorder %v1401_v14, 3  ;;  %v556_v30 = vld [vmem:[#allocation3] sm:$0xff]  ;;  %v560_v37 = vld [vmem:[#allocation2 + $0x10] sm:$0xff] }
  0x6d   : > { %v1230_v32 = vmov 0.0   ;;  %v582_v39 = vld [vmem:[#allocation3 + $0x18] sm:$0xff]  ;;  %v566_v44 = vld [vmem:[#allocation4] sm:$0xff]  ;;  %v976_v47 = vld [vmem:[%s1404_s12 + $0x28] sm:$0xff] }
  0x6e   : > { %v542_v17 = vadd.s32 8, %v541_v16  ;;  %v544_v18 = vadd.s32 %v543_v15, %v541_v16  ;;  %v587_v50 = vld [vmem:[#allocation2] sm:$0xff]  ;;  %v594_v52 = vld [vmem:[#allocation4 + $0x8] sm:$0xff]  ;;  %v978_v60 = vld [vmem:[%s1404_s12 + $0x38] sm:$0xff] }
  0x6f   : > { %v610_v0 = vld [vmem:[#allocation3 + $0x8] sm:$0xff]  ;;  %v615_v6 = vld [vmem:[#allocation2 + $0x18] sm:$0xff]  ;;  %v622_v9 = vld [vmem:[#allocation4 + $0x10] sm:$0xff] }
  0x70   : > { %v1443_v23 = vadd.s32 %v543_v15, %v542_v17  ;;  %vm546_vm13 = vcmp.lt.s32.totalorder %v544_v18, 20  ;;  %v638_v14 = vld [vmem:[#allocation3 + $0x10] sm:$0xff] }
  0x71   : > { %v554_v26 = vsel %vm546_vm13, %v548_v19, 0.0  ;;  %vm1453_vm0 = vmand %vm550_vm8, %vm546_vm13  ;;  %v579_v28 = vsel %vm546_vm13, %v973_v20, 0.0  ;;  %v607_v29 = vsel %vm546_vm13, %v975_v21, 0.0  ;;  %v1474_v35 = vsel %vm546_vm13, %v977_v22, 0.0  ;;  %v643_v20 = vld [vmem:[#allocation2 + $0x8] sm:$0xff]  ;;  %v650_v22 = vld [vmem:[#allocation4 + $0x18] sm:$0xff] }
  0x72   : > { %vm547_vm2 = vcmp.lt.s32.totalorder %v1443_v23, 20  ;;  %v561_v31 = vsel %vm1453_vm0, %v554_v26, 0.0  ;;  %v567_v33 = vsel %vm1453_vm0, 1.0, %v1230_v32  ;;  %vm1469_vm3 = vmand %vm575_vm10, %vm546_vm13 }
  0x73   : > { %v555_v36 = vsel %vm547_vm2, %v549_v24, 0.0  ;;  %vm553_vm4 = vmand %vm551_vm9, %vm547_vm2  ;;  %v580_v38 = vsel %vm547_vm2, %v974_v25, 0.0  ;;  %v588_v40 = vsel %vm1469_vm3, %v579_v28, 0.0  ;;  %v595_v41 = vsel %vm1469_vm3, 1.0, %v1230_v32 }
  0x74   : > { %v557_v42 = vadd.f32 %v555_v36, %v554_v26  ;;  %v562_v43 = vsel %vm553_vm4, %v555_v36, 0.0  ;;  %v568_v45 = vsel %vm553_vm4, 1.0, %v1230_v32  ;;  %v583_v46 = vadd.f32 %v580_v38, %v579_v28  ;;  %vm578_vm5 = vmand %vm576_vm11, %vm547_vm2 }
  0x75   : > { %v563_v48 = vadd.f32 %v562_v43, %v561_v31  ;;  %v569_v49 = vadd.f32 %v568_v45, %v567_v33  ;;  %v589_v51 = vsel %vm578_vm5, %v580_v38, 0.0  ;;  %v596_v53 = vsel %vm578_vm5, 1.0, %v1230_v32  ;;  %vm1499_vm6 = vmand %vm603_vm12, %vm546_vm13 }
  0x76   : > { %v558_v55 = vadd.f32 %v557_v42, %v556_v30  ;;  %v584_v56 = vadd.f32 %v583_v46, %v582_v39  ;;  %v590_v57 = vadd.f32 %v589_v51, %v588_v40  ;;  %v597_v58 = vadd.f32 %v596_v53, %v595_v41  ;;  %vm1507_vm7 = vmand %vm604_vm14, %vm547_vm2 }
  0x77   : > { %v564_v61 = vadd.f32 %v563_v48, %v560_v37  ;;  %v570_v62 = vadd.f32 %v569_v49, %v566_v44  ;;  %v608_v63 = vsel %vm547_vm2, %v976_v47, 0.0  ;;  %v616_v1 = vsel %vm1499_vm6, %v607_v29, 0.0  ;;  %vm1519_vm8 = vmand %vm631_vm15, %vm546_vm13 }
  0x78   : > { %559 = vst [vmem:[#allocation3] sm:$0xff] %v558_v55  ;;  %585 = vst [vmem:[#allocation3 + $0x18] sm:$0xff] %v584_v56  ;;  %v591_v3 = vadd.f32 %v590_v57, %v587_v50  ;;  %v598_v4 = vadd.f32 %v597_v58, %v594_v52  ;;  %v611_v5 = vadd.f32 %v608_v63, %v607_v29  ;;  %v617_v7 = vsel %vm1507_vm7, %v608_v63, 0.0 }
  0x79   : > { %vm1529_vm9 = vmand %vm632_vm1, %vm547_vm2  ;;  %565 = vst [vmem:[#allocation2 + $0x10] sm:$0xff] %v564_v61  ;;  %v618_v13 = vadd.f32 %v617_v7, %v616_v1  ;;  %v623_v10 = vsel %vm1499_vm6, 1.0, %v1230_v32  ;;  %v624_v11 = vsel %vm1507_vm7, 1.0, %v1230_v32  ;;  %v636_v12 = vsel %vm547_vm2, %v978_v60, 0.0 }
  0x7a   : > { %571 = vst [vmem:[#allocation4] sm:$0xff] %v570_v62  ;;  %592 = vst [vmem:[#allocation2] sm:$0xff] %v591_v3  ;;  %v612_v15 = vadd.f32 %v611_v5, %v610_v0  ;;  %v625_v16 = vadd.f32 %v624_v11, %v623_v10  ;;  %v639_v17 = vadd.f32 %v636_v12, %v1474_v35  ;;  %v644_v18 = vsel %vm1519_vm8, %v1474_v35, 0.0 }
  0x7b   : > { %599 = vst [vmem:[#allocation4 + $0x8] sm:$0xff] %v598_v4  ;;  %v619_v19 = vadd.f32 %v618_v13, %v615_v6  ;;  %v645_v21 = vsel %vm1529_vm9, %v636_v12, 0.0  ;;  %v651_v23 = vsel %vm1519_vm8, 1.0, %v1230_v32  ;;  %v652_v24 = vsel %vm1529_vm9, 1.0, %v1230_v32 }
  0x7c   : > { %613 = vst [vmem:[#allocation3 + $0x8] sm:$0xff] %v612_v15  ;;  %v626_v25 = vadd.f32 %v625_v16, %v622_v9  ;;  %v640_v26 = vadd.f32 %v639_v17, %v638_v14  ;;  %v646_v27 = vadd.f32 %v645_v21, %v644_v18  ;;  %v653_v28 = vadd.f32 %v652_v24, %v651_v23 }
  0x7d   : > { %620 = vst [vmem:[#allocation2 + $0x18] sm:$0xff] %v619_v19 }
  0x7e   : > { %627 = vst [vmem:[#allocation4 + $0x10] sm:$0xff] %v626_v25  ;;  %641 = vst [vmem:[#allocation3 + $0x10] sm:$0xff] %v640_v26  ;;  %v647_v29 = vadd.f32 %v646_v27, %v643_v20  ;;  %v654_v30 = vadd.f32 %v653_v28, %v650_v22 }
  0x80   : > { %648 = vst [vmem:[#allocation2 + $0x8] sm:$0xff] %v647_v29  ;;  %655 = vst [vmem:[#allocation4 + $0x18] sm:$0xff] %v654_v30 }
  0x81 PF: > { %v704_v31 = vld [vmem:[#allocation3] sm:$0xff]  ;;  %v659_v33 = vld [vmem:[#allocation2 + $0x10] sm:$0xff]  ;;  %v705_v34 = vld [vmem:[#allocation3 + $0x18] sm:$0xff]  ;;  %v675_v45 = vlaneseq  ;;  %vm693_vm10 = vcmask 1041409   ;;  %vm695_vm11 = vcmask 1042434   ;;  %vm697_vm12 = vcmask 1043459  }
  0x82   : > { %708 = vadd.xlane.f32.xlu1 %v704_v31  ;;  %663 = vadd.xlane.f32.xlu0 %v659_v33  ;;  %v660_v35 = vld [vmem:[#allocation2] sm:$0xff]  ;;  %v744_v37 = vld [vmem:[#allocation4 + $0x8] sm:$0xff]  ;;  %vm700_vm13 = vcmask 60416   ;;  %vm782_vm14 = vcmask 7168   ;;  %vm784_vm15 = vcmask 15360   ;;  %vm786_vm0 = vcmask 19456  }
  0x83   : > { %v706_v32 = vld [vmem:[#allocation3 + $0x8] sm:$0xff]  ;;  %v743_v38 = vld [vmem:[#allocation4] sm:$0xff]  ;;  %v676_v48 = vand.u32 127, %v675_v45  ;;  %v678_v49 = vshrl.u32 %v675_v45, 7 }
  0x84   : > { %v661_v36 = vld [vmem:[#allocation2 + $0x18] sm:$0xff] }
  0x85   : > { %v707_v39 = vld [vmem:[#allocation3 + $0x10] sm:$0xff]  ;;  %v679_v52 = vsub.s32 %v676_v48, %v678_v49 }
  0x86   : > { %710 = vadd.xlane.f32.xlu1 %v705_v34  ;;  %665 = vadd.xlane.f32.xlu0 %v660_v35  ;;  %v745_v41 = vld [vmem:[#allocation4 + $0x10] sm:$0xff] }
  0x87   : > { %v662_v40 = vld [vmem:[#allocation2 + $0x8] sm:$0xff]  ;;  %v746_v42 = vld [vmem:[#allocation4 + $0x18] sm:$0xff] }
  0x8a   : > { %712 = vadd.xlane.f32.xlu1 %v706_v32  ;;  %667 = vadd.xlane.f32.xlu0 %v661_v36 }
  0x8e   : > { %749 = vadd.xlane.f32.xlu1 %v744_v37  ;;  %747 = vadd.xlane.f32.xlu0 %v743_v38 }
  0x92   : > { %714 = vadd.xlane.f32.xlu1 %v707_v39  ;;  %669 = vadd.xlane.f32.xlu0 %v662_v40 }
  0x96   : > { %751 = vadd.xlane.f32.xlu0 %v745_v41  ;;  %753 = vadd.xlane.f32.xlu1 %v746_v42 }
 0x10b   : > { %v709_v43 = vpop.xlane.xlu1 %708  ;;  %v664_v44 = vpop.xlane.xlu0 %663 }
 0x10c   : > { %v723_v59 = vrot.slane %v709_v43, %v679_v52  ;;  %v680_v60 = vrot.slane %v664_v44, %v679_v52 }
 0x10f   : > { %v711_v46 = vpop.xlane.xlu1 %710  ;;  %v666_v47 = vpop.xlane.xlu0 %665 }
 0x110   : > { %v727_v55 = vrot.slane %v711_v46, %v679_v52  ;;  %v684_v56 = vrot.slane %v666_v47, %v679_v52 }
 0x112   : > { %v736_v63 = vsel %vm693_vm10, %v727_v55, %v723_v59  ;;  %v694_v0 = vsel %vm693_vm10, %v684_v56, %v680_v60 }
 0x113   : > { %v713_v50 = vpop.xlane.xlu1 %712  ;;  %v668_v51 = vpop.xlane.xlu0 %667 }
 0x114   : > { %v731_v57 = vrot.slane %v713_v50, %v679_v52  ;;  %v688_v58 = vrot.slane %v668_v51, %v679_v52 }
 0x116   : > { %v737_v5 = vsel %vm695_vm11, %v731_v57, %v736_v63  ;;  %v696_v6 = vsel %vm695_vm11, %v688_v58, %v694_v0 }
 0x117   : > { %v750_v53 = vpop.xlane.xlu1 %749  ;;  %v748_v54 = vpop.xlane.xlu0 %747 }
 0x118   : > { %v766_v3 = vrot.slane %v750_v53, %v679_v52  ;;  %v762_v4 = vrot.slane %v748_v54, %v679_v52 }
 0x11a   : > { %v775_v15 = vsel %vm693_vm10, %v766_v3, %v762_v4 }
 0x11b   : > { %v715_v61 = vpop.xlane.xlu1 %714  ;;  %v670_v62 = vpop.xlane.xlu0 %669 }
 0x11c   : > { %v735_v1 = vrot.slane %v715_v61, %v679_v52  ;;  %v692_v2 = vrot.slane %v670_v62, %v679_v52 }
 0x11e   : > { %v738_v7 = vsel %vm697_vm12, %v735_v1, %v737_v5  ;;  %v698_v8 = vsel %vm697_vm12, %v692_v2, %v696_v6 }
 0x11f   : > { %v752_v13 = vpop.xlane.xlu0 %751  ;;  %v754_v9 = vpop.xlane.xlu1 %753  ;;  %v740_v10 = vsel %vm700_vm13, %v738_v7, 0.0  ;;  %v701_v11 = vsel %vm700_vm13, %v698_v8, 0.0 }
 0x120   : > { %v770_v12 = vrot.slane %v752_v13, %v679_v52  ;;  %v774_v14 = vrot.slane %v754_v9, %v679_v52  ;;  %741 = vadd.xlane.f32.xlu1 %v740_v10  ;;  %702 = vadd.xlane.f32.xlu0 %v701_v11 }
 0x122   : > { %v776_v16 = vsel %vm695_vm11, %v770_v12, %v775_v15 }
 0x123   : > { %v777_v17 = vsel %vm697_vm12, %v774_v14, %v776_v16 }
 0x124   : > { %v779_v18 = vsel %vm700_vm13, %v777_v17, 0.0 }
 0x125   : > { %780 = vadd.xlane.f32.xlu0 %v779_v18 }
 0x1a9   : > { %v703_v19 = vpop.xlane.xlu0 %702  ;;  %v742_v20 = vpop.xlane.xlu1 %741 }
 0x1aa   : > { %v783_v21 = vsel %vm782_vm14, %v703_v19, %v742_v20 }
 0x1ae   : > { %v781_v22 = vpop.xlane.xlu0 %780 }
 0x1af   : > { %v785_v23 = vsel %vm784_vm15, %v783_v21, %v781_v22 }
 0x1b0   : > { %787 = vst.msk [vmem:[%s1397_s28] sm:$0xf] %vm786_vm0, %v785_v23 }
 0x1b1 PF: > { %s12_s15 = sadd.s32 1, %s1194_s15   ;;  %s1607_s9 = smov %s1174_s10 }
 0x1b2   : > { %p9_p12 = scmp.ge.s32.totalorder %s12_s15, 6   ;;  %s1608_s10 = smov %s1299_s24 }
 0x1b3   : > { %s1609_s11 = smov %s1186_s13  ;;  %s1610_s12 = smov %s1190_s14 }
 0x1b4   : > { %s1611_s13 = smov %s1614_s16  ;;  %s1612_s14 = smov %s1618_s17 }
 0x1b5   :  { %11 = sbr.rel (!%p9_p12) target bundleno = 4 (0x4), region = 188 }

</bundles_post_ra>
